<compile_context>
chip_gen: v7x
topology: tpu7x:2x2x1
jax: 0.10.0
libtpu: 0.0.40
codegen_flags: <defaults>
</compile_context>

<pallas_src>
import functools

import jax
import jax.numpy as jnp
from jax import lax
from jax.experimental import pallas as pl
from jax.experimental.pallas import tpu as pltpu

FILTER_LENGTHS = (2, 3, 4)     # filters_length=[2, 3, 4] in the torch module
K_MAX = max(FILTER_LENGTHS)
LANE = 128


def _round_up(x, m):
    return (x + m - 1) // m * m


def cnn_classifier_kernel(l_seq, ids_ref, folded_ref, bc_ref, mask_ref,
                          wh_ref, bh_ref, wo_ref, bo_ref, out_ref):
    tbl, kmax = ids_ref.shape            # (TB*L, K_MAX) im2col token ids
    tb = tbl // l_seq
    _, vpad, cpad = folded_ref.shape     # (K_MAX, VPAD, CPAD)

    ids = ids_ref[...]                                        # int32
    iota = lax.broadcasted_iota(jnp.int32, (tbl, vpad), 1)

    # Per-tap one-hot @ folded(emb x conv_w) slab, accumulated in f32.
    # One compare per tap, bool->bf16 cast, no select, no second matmul.
    conv = None
    for dk in range(kmax):
        one_hot = (iota == ids[:, dk:dk + 1]).astype(jnp.bfloat16)
        part = jnp.dot(one_hot, folded_ref[dk],
                       preferred_element_type=jnp.float32)
        conv = part if conv is None else conv + part          # (TB*L, CPAD)

    # Global max pool over valid positions via precomputed additive mask.
    conv = conv.reshape(tb, l_seq, cpad) + mask_ref[...][None]
    pooled = jnp.max(conv, axis=1)                            # (TB, CPAD) f32

    # conv bias after the pool (exact: max(x+b) == max(x)+b), then ReLU.
    feats = jnp.maximum(pooled + bc_ref[...], 0.0)

    # hidden Linear + ReLU (dropout=0.0 -> skipped), then output Linear.
    h = jnp.maximum(
        jnp.dot(feats.astype(jnp.bfloat16), wh_ref[...],
                preferred_element_type=jnp.float32) + bh_ref[...], 0.0)
    out_ref[...] = (
        jnp.dot(h.astype(jnp.bfloat16), wo_ref[...],
                preferred_element_type=jnp.float32) + bo_ref[...])


def pack_params(params, l_seq):
    """One-time packing of the frozen parameters (hoisted out of forward)."""
    emb = params["embeddings"].astype(jnp.float32)            # (vocab, V)
    vocab, V = emb.shape
    F = params[f"conv{FILTER_LENGTHS[0]}_w"].shape[0]
    C = F * len(FILTER_LENGTHS)
    H = params["hidden_w"].shape[0]
    n_labels = params["output_w"].shape[0]
    CPAD = _round_up(C, LANE)
    HPAD = _round_up(H, LANE)
    NPAD = _round_up(n_labels, LANE)
    VPAD = _round_up(vocab, LANE)

    # Fold each conv tap's weights into the embedding table:
    #   folded[dk][t, i*F + f] = emb[t] . conv_w_i[f, :, dk]  (0 if dk >= k_i)
    # so the kernel's per-tap one-hot matmul directly yields conv activations.
    # TODO(synk): for large vocabularies keep `folded` in HBM
    # (memory_space=pl.ANY) and stream vocab chunks via make_async_copy
    # instead of a fully VMEM-resident block (v7x has only 64 MiB VMEM).
    folded = jnp.zeros((K_MAX, VPAD, CPAD), jnp.float32)
    for dk in range(K_MAX):
        wslab = jnp.zeros((V, CPAD), jnp.float32)
        for i, k in enumerate(FILTER_LENGTHS):
            if dk < k:
                w = params[f"conv{k}_w"]                      # torch (F, V, k)
                wslab = wslab.at[:, i * F:(i + 1) * F].set(w[:, :, dk].T)
        folded = folded.at[dk, :vocab, :].set(emb @ wslab)
    folded = folded.astype(jnp.bfloat16)                      # single rounding

    # Conv biases and valid-position additive mask (0 / -1e30) per column.
    bc = jnp.zeros((1, CPAD), jnp.float32)
    mask = jnp.zeros((l_seq, CPAD), jnp.float32)
    pos = jnp.arange(l_seq)[:, None]
    for i, k in enumerate(FILTER_LENGTHS):
        bc = bc.at[0, i * F:(i + 1) * F].set(params[f"conv{k}_b"])
        mask = mask.at[:, i * F:(i + 1) * F].set(
            jnp.where(pos < (l_seq - k + 1), 0.0, -1e30))

    # Hidden / output layers, padded to 128-lane widths (exact through ReLU).
    wh = jnp.zeros((CPAD, HPAD), jnp.float32).at[:C, :H].set(
        params["hidden_w"].T).astype(jnp.bfloat16)
    bh = jnp.zeros((1, HPAD), jnp.float32).at[0, :H].set(params["hidden_b"])
    wo = jnp.zeros((HPAD, NPAD), jnp.float32).at[:H, :n_labels].set(
        params["output_w"].T).astype(jnp.bfloat16)
    bo = jnp.zeros((1, NPAD), jnp.float32).at[0, :n_labels].set(
        params["output_b"])

    packed = dict(folded=folded, bc=bc, mask=mask, wh=wh, bh=bh, wo=wo, bo=bo)
    return packed, n_labels


def _pick_batch_tile(B):
    # v5e/v6e: single TensorCore -> one big grid step (amortize ~0.35us/step,
    # larger unmasked output store).  v7x: two TensorCores -> keep 2 parallel
    # grid steps so neither core idles.
    dual_tc = False
    try:
        dual_tc = "v7" in jax.devices()[0].device_kind.lower()
    except Exception:
        pass
    if dual_tc and B % 2 == 0 and (B // 2) % 8 == 0:
        return B // 2
    return B


def cnn_classifier_forward(token_ids, packed, n_labels, *, batch_tile=None):
    """token_ids: (B, L) int32; returns logits (B, n_labels) f32."""
    B, L = token_ids.shape
    folded = packed["folded"]
    _, VPAD, CPAD = folded.shape
    HPAD = packed["wh"].shape[1]
    NPAD = packed["wo"].shape[1]

    TB = batch_tile if batch_tile is not None else _pick_batch_tile(B)
    TB = min(TB, B)
    assert B % TB == 0, "batch must be divisible by the batch tile"
    assert (TB * L) % 8 == 0, "TB*L must be a multiple of 8"

    # im2col token ids: taps[b, n, dk] = token at position n+dk (0-padded).
    # Taps past each filter's length hit zero weight slabs and out-of-range
    # positions are masked, so this is exact (no reliance on emb[0] == 0).
    ids_pad = jnp.pad(token_ids.astype(jnp.int32), ((0, 0), (0, K_MAX - 1)))
    taps = jnp.stack([ids_pad[:, dk:dk + L] for dk in range(K_MAX)], axis=-1)
    ids = taps.reshape(B * L, K_MAX)

    full = lambda a: pl.BlockSpec(a.shape, lambda i, nd=a.ndim: (0,) * nd)
    flops = (2 * B * L * VPAD * CPAD * K_MAX
             + 2 * B * CPAD * HPAD + 2 * B * HPAD * NPAD)
    bytes_accessed = (
        ids.size * 4 + B * NPAD * 4
        + (folded.size + packed["wh"].size + packed["wo"].size) * 2
        + (packed["bc"].size + packed["mask"].size
           + packed["bh"].size + packed["bo"].size) * 4)

    out = pl.pallas_call(
        functools.partial(cnn_classifier_kernel, L),
        out_shape=jax.ShapeDtypeStruct((B, NPAD), jnp.float32),
        grid=(B // TB,),
        in_specs=[
            pl.BlockSpec((TB * L, K_MAX), lambda i: (i, 0)),   # im2col ids
            full(folded), full(packed["bc"]), full(packed["mask"]),
            full(packed["wh"]), full(packed["bh"]),
            full(packed["wo"]), full(packed["bo"]),
        ],
        out_specs=pl.BlockSpec((TB, NPAD), lambda i: (i, 0)),  # lane-dense out
        compiler_params=pltpu.CompilerParams(
            dimension_semantics=("parallel",)),
        cost_estimate=pl.CostEstimate(flops=flops, transcendentals=0,
                                      bytes_accessed=bytes_accessed),
    )(ids, folded, packed["bc"], packed["mask"],
      packed["wh"], packed["bh"], packed["wo"], packed["bo"])
    return out[:, :n_labels]


def reference_forward(token_ids, params):
    """Pure-JAX f32 reference matching the PyTorch forward."""
    x = jnp.take(params["embeddings"], token_ids, axis=0)      # (B, L, V)
    B, L, _ = x.shape
    feats = []
    for k in FILTER_LENGTHS:
        w = params[f"conv{k}_w"]                               # (F, V, k)
        b = params[f"conv{k}_b"]
        lout = L - k + 1
        acc = jnp.zeros((B, lout, w.shape[0]), jnp.float32)
        for dk in range(k):
            acc = acc + jnp.einsum("blv,fv->blf", x[:, dk:dk + lout, :],
                                   w[:, :, dk])
        acc = acc + b
        feats.append(jax.nn.relu(jnp.max(acc, axis=1)))
    hcat = jnp.concatenate(feats, axis=1)
    h = jax.nn.relu(hcat @ params["hidden_w"].T + params["hidden_b"])
    return h @ params["output_w"].T + params["output_b"]


def init_params(key, vocab_size=50, vector_size=32, filters_count=16,
                hidden=32, n_labels=4):
    keys = jax.random.split(key, 12)
    params = {}
    # nn.Embedding.from_pretrained(randn(vocab, V)) with padding_idx=0 zeroed
    emb = jax.random.normal(keys[0], (vocab_size, vector_size), jnp.float32)
    params["embeddings"] = emb.at[0].set(0.0)
    for i, k in enumerate(FILTER_LENGTHS):
        params[f"conv{k}_w"] = 0.1 * jax.random.normal(
            keys[1 + 2 * i], (filters_count, vector_size, k), jnp.float32)
        params[f"conv{k}_b"] = 0.01 * jax.random.normal(
            keys[2 + 2 * i], (filters_count,), jnp.float32)
    in_feat = filters_count * len(FILTER_LENGTHS)
    params["hidden_w"] = 0.1 * jax.random.normal(keys[7], (hidden, in_feat),
                                                 jnp.float32)
    params["hidden_b"] = 0.01 * jax.random.normal(keys[8], (hidden,),
                                                  jnp.float32)
    params["output_w"] = 0.1 * jax.random.normal(keys[9], (n_labels, hidden),
                                                 jnp.float32)
    params["output_b"] = 0.01 * jax.random.normal(keys[10], (n_labels,),
                                                  jnp.float32)
    return params


if __name__ == "__main__":
    key = jax.random.PRNGKey(0)
    pkey, xkey = jax.random.split(key)
    params = init_params(pkey)

    B, L, vocab = 16, 16, 50
    token_ids = jax.random.randint(xkey, (B, L), 0, vocab, dtype=jnp.int32)

    # Pack once (hoisted out of the per-call forward), then run the kernel.
    packed, n_labels = pack_params(params, L)
    packed = jax.tree_util.tree_map(jax.block_until_ready, packed)

    logits = jax.block_until_ready(
        cnn_classifier_forward(token_ids, packed, n_labels))
    assert logits.shape == (B, n_labels), logits.shape

    ref = reference_forward(token_ids, params)
    max_err = float(jnp.max(jnp.abs(logits - ref)))
    assert max_err < 0.1, f"max abs err vs f32 reference: {max_err}"
    print("KERNEL_OK")
</pallas_src>

<mosaic_0001>
module attributes {stable_mosaic.version = 11 : i64} {
  func.func @cnn_classifier_kernel(%arg0: i32, %arg1: memref<256x4xi32, #tpu.memory_space<vmem>>, %arg2: memref<4x128x128xbf16, #tpu.memory_space<vmem>>, %arg3: memref<1x128xf32, #tpu.memory_space<vmem>>, %arg4: memref<16x128xf32, #tpu.memory_space<vmem>>, %arg5: memref<128x128xbf16, #tpu.memory_space<vmem>>, %arg6: memref<1x128xf32, #tpu.memory_space<vmem>>, %arg7: memref<128x128xbf16, #tpu.memory_space<vmem>>, %arg8: memref<1x128xf32, #tpu.memory_space<vmem>>, %arg9: memref<16x128xf32, #tpu.memory_space<vmem>>) attributes {dimension_semantics = [#tpu.dimension_semantics<parallel>], iteration_bounds = array<i64: 1>, scalar_prefetch = 0 : i64, scratch_operands = 0 : i64, tpu.core_type = #tpu.core_type<tc>, window_params = [{transform_indices = @transform_0, window_bounds = array<i64: 256, 4>}, {pipeline_mode = #tpu.pipeline_mode<synchronous>, transform_indices = @transform_1, window_bounds = array<i64: 4, 128, 128>}, {pipeline_mode = #tpu.pipeline_mode<synchronous>, transform_indices = @transform_2, window_bounds = array<i64: 1, 128>}, {pipeline_mode = #tpu.pipeline_mode<synchronous>, transform_indices = @transform_3, window_bounds = array<i64: 16, 128>}, {pipeline_mode = #tpu.pipeline_mode<synchronous>, transform_indices = @transform_4, window_bounds = array<i64: 128, 128>}, {pipeline_mode = #tpu.pipeline_mode<synchronous>, transform_indices = @transform_5, window_bounds = array<i64: 1, 128>}, {pipeline_mode = #tpu.pipeline_mode<synchronous>, transform_indices = @transform_6, window_bounds = array<i64: 128, 128>}, {pipeline_mode = #tpu.pipeline_mode<synchronous>, transform_indices = @transform_7, window_bounds = array<i64: 1, 128>}, {transform_indices = @transform_8, window_bounds = array<i64: 16, 128>}]} {
    %c0 = arith.constant 0 : index
    %c0_0 = arith.constant 0 : index
    %0 = vector.load %arg1[%c0, %c0_0] : memref<256x4xi32, #tpu.memory_space<vmem>>, vector<256x4xi32>
    %1 = tpu.iota {dimensions = array<i32: 1>} : vector<256x128xi32>
    %2 = vector.extract_strided_slice %0 {offsets = [0, 0], sizes = [256, 1], strides = [1, 1]} : vector<256x4xi32> to vector<256x1xi32>
    %3 = vector.broadcast %2 : vector<256x1xi32> to vector<256x128xi32>
    %4 = arith.cmpi eq, %1, %3 : vector<256x128xi32>
    %5 = arith.extui %4 : vector<256x128xi1> to vector<256x128xi32>
    %6 = arith.sitofp %5 : vector<256x128xi32> to vector<256x128xf32>
    %7 = arith.truncf %6 : vector<256x128xf32> to vector<256x128xbf16>
    %c0_1 = arith.constant 0 : index
    %c0_2 = arith.constant 0 : index
    %c0_3 = arith.constant 0 : index
    %8 = vector.load %arg2[%c0_1, %c0_2, %c0_3] : memref<4x128x128xbf16, #tpu.memory_space<vmem>>, vector<1x128x128xbf16>
    %9 = vector.shape_cast %8 : vector<1x128x128xbf16> to vector<128x128xbf16>
    %cst = arith.constant dense<0.000000e+00> : vector<256x128xf32>
    %10 = tpu.matmul %7, %9, %cst {dimension_numbers = #tpu.dot_dimension_numbers<[1], [0], [0], [1], [0, 0, 1, 1], [], []>} : vector<256x128xbf16>, vector<128x128xbf16>, vector<256x128xf32> -> vector<256x128xf32>
    %11 = vector.extract_strided_slice %0 {offsets = [0, 1], sizes = [256, 1], strides = [1, 1]} : vector<256x4xi32> to vector<256x1xi32>
    %12 = vector.broadcast %11 : vector<256x1xi32> to vector<256x128xi32>
    %13 = arith.cmpi eq, %1, %12 : vector<256x128xi32>
    %14 = arith.extui %13 : vector<256x128xi1> to vector<256x128xi32>
    %15 = arith.sitofp %14 : vector<256x128xi32> to vector<256x128xf32>
    %16 = arith.truncf %15 : vector<256x128xf32> to vector<256x128xbf16>
    %c1 = arith.constant 1 : index
    %c0_4 = arith.constant 0 : index
    %c0_5 = arith.constant 0 : index
    %17 = vector.load %arg2[%c1, %c0_4, %c0_5] : memref<4x128x128xbf16, #tpu.memory_space<vmem>>, vector<1x128x128xbf16>
    %18 = vector.shape_cast %17 : vector<1x128x128xbf16> to vector<128x128xbf16>
    %cst_6 = arith.constant dense<0.000000e+00> : vector<256x128xf32>
    %19 = tpu.matmul %16, %18, %cst_6 {dimension_numbers = #tpu.dot_dimension_numbers<[1], [0], [0], [1], [0, 0, 1, 1], [], []>} : vector<256x128xbf16>, vector<128x128xbf16>, vector<256x128xf32> -> vector<256x128xf32>
    %20 = arith.addf %10, %19 : vector<256x128xf32>
    %21 = vector.extract_strided_slice %0 {offsets = [0, 2], sizes = [256, 1], strides = [1, 1]} : vector<256x4xi32> to vector<256x1xi32>
    %22 = vector.broadcast %21 : vector<256x1xi32> to vector<256x128xi32>
    %23 = arith.cmpi eq, %1, %22 : vector<256x128xi32>
    %24 = arith.extui %23 : vector<256x128xi1> to vector<256x128xi32>
    %25 = arith.sitofp %24 : vector<256x128xi32> to vector<256x128xf32>
    %26 = arith.truncf %25 : vector<256x128xf32> to vector<256x128xbf16>
    %c2 = arith.constant 2 : index
    %c0_7 = arith.constant 0 : index
    %c0_8 = arith.constant 0 : index
    %27 = vector.load %arg2[%c2, %c0_7, %c0_8] : memref<4x128x128xbf16, #tpu.memory_space<vmem>>, vector<1x128x128xbf16>
    %28 = vector.shape_cast %27 : vector<1x128x128xbf16> to vector<128x128xbf16>
    %cst_9 = arith.constant dense<0.000000e+00> : vector<256x128xf32>
    %29 = tpu.matmul %26, %28, %cst_9 {dimension_numbers = #tpu.dot_dimension_numbers<[1], [0], [0], [1], [0, 0, 1, 1], [], []>} : vector<256x128xbf16>, vector<128x128xbf16>, vector<256x128xf32> -> vector<256x128xf32>
    %30 = arith.addf %20, %29 : vector<256x128xf32>
    %31 = vector.extract_strided_slice %0 {offsets = [0, 3], sizes = [256, 1], strides = [1, 1]} : vector<256x4xi32> to vector<256x1xi32>
    %32 = vector.broadcast %31 : vector<256x1xi32> to vector<256x128xi32>
    %33 = arith.cmpi eq, %1, %32 : vector<256x128xi32>
    %34 = arith.extui %33 : vector<256x128xi1> to vector<256x128xi32>
    %35 = arith.sitofp %34 : vector<256x128xi32> to vector<256x128xf32>
    %36 = arith.truncf %35 : vector<256x128xf32> to vector<256x128xbf16>
    %c3 = arith.constant 3 : index
    %c0_10 = arith.constant 0 : index
    %c0_11 = arith.constant 0 : index
    %37 = vector.load %arg2[%c3, %c0_10, %c0_11] : memref<4x128x128xbf16, #tpu.memory_space<vmem>>, vector<1x128x128xbf16>
    %38 = vector.shape_cast %37 : vector<1x128x128xbf16> to vector<128x128xbf16>
    %cst_12 = arith.constant dense<0.000000e+00> : vector<256x128xf32>
    %39 = tpu.matmul %36, %38, %cst_12 {dimension_numbers = #tpu.dot_dimension_numbers<[1], [0], [0], [1], [0, 0, 1, 1], [], []>} : vector<256x128xbf16>, vector<128x128xbf16>, vector<256x128xf32> -> vector<256x128xf32>
    %40 = arith.addf %30, %39 : vector<256x128xf32>
    %41 = vector.shape_cast %40 : vector<256x128xf32> to vector<16x16x128xf32>
    %c0_13 = arith.constant 0 : index
    %c0_14 = arith.constant 0 : index
    %42 = vector.load %arg4[%c0_13, %c0_14] : memref<16x128xf32, #tpu.memory_space<vmem>>, vector<16x128xf32>
    %43 = vector.shape_cast %42 : vector<16x128xf32> to vector<1x16x128xf32>
    %44 = vector.broadcast %43 : vector<1x16x128xf32> to vector<16x16x128xf32>
    %45 = arith.addf %41, %44 : vector<16x16x128xf32>
    %cst_15 = arith.constant dense<0xFF800000> : vector<16x128xf32>
    %46 = vector.multi_reduction <maximumf>, %45, %cst_15 [1] : vector<16x16x128xf32> to vector<16x128xf32>
    %c0_16 = arith.constant 0 : index
    %c0_17 = arith.constant 0 : index
    %47 = vector.load %arg3[%c0_16, %c0_17] : memref<1x128xf32, #tpu.memory_space<vmem>>, vector<1x128xf32>
    %48 = vector.broadcast %47 : vector<1x128xf32> to vector<16x128xf32>
    %49 = arith.addf %46, %48 : vector<16x128xf32>
    %cst_18 = arith.constant 0.000000e+00 : f32
    %50 = vector.broadcast %cst_18 : f32 to vector<16x128xf32>
    %51 = arith.maximumf %49, %50 : vector<16x128xf32>
    %52 = arith.truncf %51 : vector<16x128xf32> to vector<16x128xbf16>
    %c0_19 = arith.constant 0 : index
    %c0_20 = arith.constant 0 : index
    %53 = vector.load %arg5[%c0_19, %c0_20] : memref<128x128xbf16, #tpu.memory_space<vmem>>, vector<128x128xbf16>
    %cst_21 = arith.constant dense<0.000000e+00> : vector<16x128xf32>
    %54 = tpu.matmul %52, %53, %cst_21 {dimension_numbers = #tpu.dot_dimension_numbers<[1], [0], [0], [1], [0, 0, 1, 1], [], []>} : vector<16x128xbf16>, vector<128x128xbf16>, vector<16x128xf32> -> vector<16x128xf32>
    %c0_22 = arith.constant 0 : index
    %c0_23 = arith.constant 0 : index
    %55 = vector.load %arg6[%c0_22, %c0_23] : memref<1x128xf32, #tpu.memory_space<vmem>>, vector<1x128xf32>
    %56 = vector.broadcast %55 : vector<1x128xf32> to vector<16x128xf32>
    %57 = arith.addf %54, %56 : vector<16x128xf32>
    %cst_24 = arith.constant 0.000000e+00 : f32
    %58 = vector.broadcast %cst_24 : f32 to vector<16x128xf32>
    %59 = arith.maximumf %57, %58 : vector<16x128xf32>
    %60 = arith.truncf %59 : vector<16x128xf32> to vector<16x128xbf16>
    %c0_25 = arith.constant 0 : index
    %c0_26 = arith.constant 0 : index
    %61 = vector.load %arg7[%c0_25, %c0_26] : memref<128x128xbf16, #tpu.memory_space<vmem>>, vector<128x128xbf16>
    %cst_27 = arith.constant dense<0.000000e+00> : vector<16x128xf32>
    %62 = tpu.matmul %60, %61, %cst_27 {dimension_numbers = #tpu.dot_dimension_numbers<[1], [0], [0], [1], [0, 0, 1, 1], [], []>} : vector<16x128xbf16>, vector<128x128xbf16>, vector<16x128xf32> -> vector<16x128xf32>
    %c0_28 = arith.constant 0 : index
    %c0_29 = arith.constant 0 : index
    %63 = vector.load %arg8[%c0_28, %c0_29] : memref<1x128xf32, #tpu.memory_space<vmem>>, vector<1x128xf32>
    %64 = vector.broadcast %63 : vector<1x128xf32> to vector<16x128xf32>
    %65 = arith.addf %62, %64 : vector<16x128xf32>
    %c0_30 = arith.constant 0 : index
    %c0_31 = arith.constant 0 : index
    %66 = vector.load %arg9[%c0_30, %c0_31] : memref<16x128xf32, #tpu.memory_space<vmem>>, vector<16x128xf32>
    tpu.vector_store %arg9[%c0_30, %c0_31], %65 {strides = array<i32>} : memref<16x128xf32, #tpu.memory_space<vmem>>, vector<16x128xf32>,
    return
  }
  func.func @transform_0(%arg0: i32) -> (i32, i32) {
    %c0_i32 = arith.constant 0 : i32
    %c0_i32_0 = arith.constant 0 : i32
    return %arg0, %c0_i32 : i32, i32
  }
  func.func @transform_1(%arg0: i32) -> (i32, i32, i32) {
    %c0_i32 = arith.constant 0 : i32
    %c0_i32_0 = arith.constant 0 : i32
    %c0_i32_1 = arith.constant 0 : i32
    %c0_i32_2 = arith.constant 0 : i32
    return %c0_i32, %c0_i32_0, %c0_i32_1 : i32, i32, i32
  }
  func.func @transform_2(%arg0: i32) -> (i32, i32) {
    %c0_i32 = arith.constant 0 : i32
    %c0_i32_0 = arith.constant 0 : i32
    %c0_i32_1 = arith.constant 0 : i32
    return %c0_i32, %c0_i32_0 : i32, i32
  }
  func.func @transform_3(%arg0: i32) -> (i32, i32) {
    %c0_i32 = arith.constant 0 : i32
    %c0_i32_0 = arith.constant 0 : i32
    %c0_i32_1 = arith.constant 0 : i32
    return %c0_i32, %c0_i32_0 : i32, i32
  }
  func.func @transform_4(%arg0: i32) -> (i32, i32) {
    %c0_i32 = arith.constant 0 : i32
    %c0_i32_0 = arith.constant 0 : i32
    %c0_i32_1 = arith.constant 0 : i32
    return %c0_i32, %c0_i32_0 : i32, i32
  }
  func.func @transform_5(%arg0: i32) -> (i32, i32) {
    %c0_i32 = arith.constant 0 : i32
    %c0_i32_0 = arith.constant 0 : i32
    %c0_i32_1 = arith.constant 0 : i32
    return %c0_i32, %c0_i32_0 : i32, i32
  }
  func.func @transform_6(%arg0: i32) -> (i32, i32) {
    %c0_i32 = arith.constant 0 : i32
    %c0_i32_0 = arith.constant 0 : i32
    %c0_i32_1 = arith.constant 0 : i32
    return %c0_i32, %c0_i32_0 : i32, i32
  }
  func.func @transform_7(%arg0: i32) -> (i32, i32) {
    %c0_i32 = arith.constant 0 : i32
    %c0_i32_0 = arith.constant 0 : i32
    %c0_i32_1 = arith.constant 0 : i32
    return %c0_i32, %c0_i32_0 : i32, i32
  }
  func.func @transform_8(%arg0: i32) -> (i32, i32) {
    %c0_i32 = arith.constant 0 : i32
    %c0_i32_0 = arith.constant 0 : i32
    return %arg0, %c0_i32 : i32, i32
  }
}

</mosaic_0001>

<bundles_post_ra>
// kernel: tpu_custom_call.1
= control target key start
LH: loop header
LB: loop body
LE: loop exit
PB: predicated region body
PF: predicated region fallthrough
CT: control target
= control target key end

     0   :  { %13 = vsyncpa [#allocation3], 0  ;;  %s4388_s0 = inlined_call_operand.vmem [shape: s32[256,4], index: 0, kind: input, shape index: {}]   ;;  %s4389_s1 = inlined_call_operand.vmem [shape: bf16[4,128,128], index: 1, kind: input, shape index: {}]   ;;  %s4390_s2 = inlined_call_operand.vmem [shape: f32[1,128], index: 2, kind: input, shape index: {}]   ;;  %s4391_s3 = inlined_call_operand.vmem [shape: f32[16,128], index: 3, kind: input, shape index: {}]   ;;  %s4392_s4 = inlined_call_operand.hbm [shape: bf16[128,128], index: 4, kind: input, shape index: {}]   ;;  %s4393_s5 = inlined_call_operand.vmem [shape: f32[1,128], index: 5, kind: input, shape index: {}]   ;;  %s4394_s6 = inlined_call_operand.hbm [shape: bf16[128,128], index: 6, kind: input, shape index: {}]   ;;  %s4395_s7 = inlined_call_operand.vmem [shape: f32[1,128], index: 7, kind: input, shape index: {}]   ;;  %s4396_s8 = inlined_call_operand.hbm [shape: f32[16,128], index: 8, kind: output, shape index: {}]  }
   0x1   :  { %14 = vsyncpa [#allocation6], 0 }
   0x2   :  { %15 = vsyncpa [#allocation4], 0  ;;  %s3386_s27 = smov [#allocation2]   ;;  %s3314_s9 = scalar_lea.hbm %s4392_s4, 1024 }
   0x3   :  { %s29_s28 = sshll.u32 %s3386_s27, 4  ;;  %p3315_p0 = scmp.ne.s32.totalorder %s4392_s4, %s3314_s9  ;;  %s30_s28 = int_to_ptr.vmem [resolvable:$true] %s29_s28 }
   0x4   :  { %p3318_p1 = scmp.lt.u32.totalorder %s3314_s9, %s4392_s4 }
   0x6   :  { %p3320_p2 = pnand %p3318_p1, %p3315_p0 }
   0x8   :  { %3323 = shalt.err (!%p3320_p2)
}
   0x9   :  { %s3324_s14 = scalar_lea.vmem %s30_s28, 1024  ;;  %p3329_p4 = scmp.lt.s32.totalorder %s30_s28, %s30_s28 }
   0xa   :  { %p3325_p3 = scmp.ne.s32.totalorder %s30_s28, %s3324_s14  ;;  %p3330_p5 = scmp.lt.s32.totalorder %s3324_s14, %s3324_s14 }
   0xc   :  { %p3331_p6 = por %p3330_p5, %p3329_p4 }
   0xe   :  { %p3332_p7 = pnand %p3331_p6, %p3325_p3 }
  0x10   :  { %3335 = shalt.err (!%p3332_p7)
}
  0x11   :  { %s3387_s15 = smov 64   ;;  %s3388_s16 = smov 4  }
  0x12   :  { %35 = dma.hbm_to_vmem [thread:$0]  %s4392_s4, 1024, %s30_s28, [#allocation3], %s3387_s15, %s3387_s15, %s3388_s16  }
  0x13   :  { %s3389_s19 = smov [#allocation5]   ;;  %s3336_s23 = scalar_lea.hbm %s4394_s6, 1024 }
  0x14   :  { %s43_s20 = sshll.u32 %s3389_s19, 4  ;;  %p3337_p8 = scmp.ne.s32.totalorder %s4394_s6, %s3336_s23  ;;  %s44_s20 = int_to_ptr.vmem [resolvable:$true] %s43_s20 }
  0x15   :  { %p3340_p9 = scmp.lt.u32.totalorder %s3336_s23, %s4394_s6 }
  0x17   :  { %p3342_p10 = pnand %p3340_p9, %p3337_p8 }
  0x19   :  { %3345 = shalt.err (!%p3342_p10)
}
  0x1a   :  { %s3346_s29 = scalar_lea.vmem %s44_s20, 1024  ;;  %p3351_p12 = scmp.lt.s32.totalorder %s44_s20, %s44_s20 }
  0x1b   :  { %p3347_p11 = scmp.ne.s32.totalorder %s44_s20, %s3346_s29  ;;  %p3352_p13 = scmp.lt.s32.totalorder %s3346_s29, %s3346_s29 }
  0x1d   :  { %p3353_p0 = por %p3352_p13, %p3351_p12 }
  0x1f   :  { %p3354_p1 = pnand %p3353_p0, %p3347_p11 }
  0x21   :  { %3357 = shalt.err (!%p3354_p1)
}
  0x22   :  { %49 = dma.hbm_to_vmem [thread:$0]  %s4394_s6, 1024, %s44_s20, [#allocation6], %s3387_s15, %s3387_s15, %s3388_s16  }
  0x23   :  { %3380 = dma.done.wait [#allocation3], 1024  }
  0x24   :  { %3381 = vsyncadd [#allocation3], 4294966272 }
  0x25   :  { %3382 = dma.done.wait [#allocation6], 1024  }
  0x26   :  { %3383 = vsyncadd [#allocation6], 4294966272  ;;  %v3390_v0 = vmov 0   ;;  %v3474_v1 = vld [vmem:[%s4388_s0 + $0x10] sm:$0xff]  ;;  %v3479_v2 = vld [vmem:[%s4388_s0] sm:$0xff]  ;;  %v3391_v44 = vmov 1   ;;  %v91_v52 = vlaneseq }
  0x27   :  { %3237 = vset.pattern.permute.xlu1 %v3390_v0  ;;  %3236 = vset.pattern.permute.xlu0 %v3390_v0  ;;  %v3486_v3 = vld [vmem:[%s4388_s0 + $0x18] sm:$0xff]  ;;  %v3491_v4 = vld [vmem:[%s4388_s0 + $0x8] sm:$0xff]  ;;  %v3503_v6 = vld [vmem:[%s4388_s0 + $0x20] sm:$0xff]  ;;  %v3392_v50 = vmov 2   ;;  %v3393_v58 = vmov 1.0|1.0  }
  0x28   :  { %100 = vperm.xlu1 %3237, %v3474_v1   ;;  %94 = vperm.xlu0 %3236, %v3479_v2   ;;  %v3498_v5 = vld [vmem:[%s4388_s0 + $0x28] sm:$0xff]  ;;  %v3510_v7 = vld [vmem:[%s4388_s0 + $0x38] sm:$0xff]  ;;  %v3515_v8 = vld [vmem:[%s4388_s0 + $0x30] sm:$0xff]  ;;  %v3754_v55 = vand.u32 127, %v91_v52  ;;  %s3397_s10 = smov [#allocation7]  }
  0x29   :  { %v3260_v9 = vld [vmem:[%s4389_s1] sm:$0xff]   ;;  %v3261_v10 = vld [vmem:[%s4389_s1 + $0x8] sm:$0xff]   ;;  %v3538_v13 = vld [vmem:[%s4388_s0 + $0x58] sm:$0xff]  ;;  %s2396_s11 = sshll.u32 %s3397_s10, 4  ;;  %s2397_s11 = int_to_ptr.vmem [resolvable:$true] %s2396_s11 }
  0x2a   :  { %v3528_v11 = vld [vmem:[%s4388_s0 + $0x48] sm:$0xff]  ;;  %v3533_v12 = vld [vmem:[%s4388_s0 + $0x40] sm:$0xff]  ;;  %2926 = vmatprep.subr.bf16.mxu0 %v3260_v9  ;;  %v3262_v14 = vld [vmem:[%s4389_s1 + $0x10] sm:$0xff]   ;;  %p3363_p3 = scmp.lt.s32.totalorder %s2397_s11, %s2397_s11 }
  0x2b   :  { %2927 = vmatpush3.bf16.msra.mxu0 %v3260_v9  ;;  %v3548_v15 = vld [vmem:[%s4388_s0 + $0x50] sm:$0xff]  ;;  %v3263_v16 = vld [vmem:[%s4389_s1 + $0x18] sm:$0xff]   ;;  %v3556_v17 = vld [vmem:[%s4388_s0 + $0x68] sm:$0xff] }
  0x2c   :  { %103 = vperm.xlu1 %3237, %v3486_v3   ;;  %97 = vperm.xlu0 %3236, %v3491_v4   ;;  %v3561_v18 = vld [vmem:[%s4388_s0 + $0x60] sm:$0xff]  ;;  %v3571_v20 = vld [vmem:[%s4388_s0 + $0x78] sm:$0xff]  ;;  %v3576_v21 = vld [vmem:[%s4388_s0 + $0x70] sm:$0xff] }
  0x2d   :  { %2928 = vmatprep.subr.bf16.mxu0 %v3261_v10  ;;  %v3264_v19 = vld [vmem:[%s4389_s1 + $0x20] sm:$0xff]   ;;  %v3265_v22 = vld [vmem:[%s4389_s1 + $0x28] sm:$0xff]   ;;  %v3266_v25 = vld [vmem:[%s4389_s1 + $0x30] sm:$0xff]  }
  0x2e   :  { %v3586_v23 = vld [vmem:[%s4388_s0 + $0x88] sm:$0xff]  ;;  %v3591_v24 = vld [vmem:[%s4388_s0 + $0x80] sm:$0xff]  ;;  %v3601_v26 = vld [vmem:[%s4388_s0 + $0x98] sm:$0xff] }
  0x2f   :  { %2929 = vmatpush3.bf16.msra.mxu0 %v3261_v10  ;;  %v3606_v27 = vld [vmem:[%s4388_s0 + $0x90] sm:$0xff]  ;;  %v3267_v28 = vld [vmem:[%s4389_s1 + $0x38] sm:$0xff]   ;;  %v3268_v29 = vld [vmem:[%s4389_s1 + $0x40] sm:$0xff]  }
  0x30   :  { %109 = vperm.xlu1 %3237, %v3498_v5   ;;  %106 = vperm.xlu0 %3236, %v3503_v6   ;;  %v3619_v30 = vld [vmem:[%s4388_s0 + $0xa8] sm:$0xff]  ;;  %v3624_v31 = vld [vmem:[%s4388_s0 + $0xa0] sm:$0xff]  ;;  %v3634_v33 = vld [vmem:[%s4388_s0 + $0xb8] sm:$0xff] }
  0x31   :  { %2930 = vmatprep.subr.bf16.mxu0 %v3262_v14  ;;  %2878 = vmatprep.subr.bf16.mxu1 %v3268_v29  ;;  %v3269_v32 = vld [vmem:[%s4389_s1 + $0x48] sm:$0xff]   ;;  %v3639_v34 = vld [vmem:[%s4388_s0 + $0xb0] sm:$0xff]  ;;  %v3656_v37 = vld [vmem:[%s4388_s0 + $0xc0] sm:$0xff] }
  0x32   :  { %2879 = vmatpush3.bf16.msra.mxu1 %v3268_v29  ;;  %v3270_v35 = vld [vmem:[%s4389_s1 + $0x50] sm:$0xff]   ;;  %v3649_v36 = vld [vmem:[%s4388_s0 + $0xc8] sm:$0xff]  ;;  %v3271_v38 = vld [vmem:[%s4389_s1 + $0x58] sm:$0xff]   ;;  %v3394_v29 = vmov 3  }
  0x33   :  { %2931 = vmatpush3.bf16.msra.mxu0 %v3262_v14  ;;  %2880 = vmatprep.subr.bf16.mxu1 %v3269_v32  ;;  %v3666_v39 = vld [vmem:[%s4388_s0 + $0xd8] sm:$0xff]  ;;  %v3671_v40 = vld [vmem:[%s4388_s0 + $0xd0] sm:$0xff]  ;;  %v3272_v41 = vld [vmem:[%s4389_s1 + $0x60] sm:$0xff]  }
  0x34   :  { %115 = vperm.xlu1 %3237, %v3510_v7   ;;  %112 = vperm.xlu0 %3236, %v3515_v8   ;;  %v3681_v42 = vld [vmem:[%s4388_s0 + $0xe8] sm:$0xff]  ;;  %v3274_v45 = vld [vmem:[%s4389_s1 + $0x70] sm:$0xff]   ;;  %v3275_v46 = vld [vmem:[%s4389_s1 + $0x78] sm:$0xff]  }
  0x35   :  { %2932 = vmatprep.subr.bf16.mxu0 %v3263_v16  ;;  %v3273_v43 = vld [vmem:[%s4389_s1 + $0x68] sm:$0xff]   ;;  %v3701_v47 = vld [vmem:[%s4388_s0 + $0xe0] sm:$0xff]  ;;  %v3709_v48 = vld [vmem:[%s4388_s0 + $0xf0] sm:$0xff] }
  0x36   :  { %2881 = vmatpush3.bf16.msra.mxu1 %v3269_v32  ;;  %v3716_v49 = vld [vmem:[%s4388_s0 + $0xf8] sm:$0xff]  ;;  %v3276_v51 = vld [vmem:[%s4389_s1 + $0x80] sm:$0xff]   ;;  %v3277_v61 = vld [vmem:[%s4389_s1 + $0x88] sm:$0xff]  }
  0x37   :  { %2933 = vmatpush3.bf16.msra.mxu0 %v3263_v16  ;;  %2882 = vmatprep.subr.bf16.mxu1 %v3270_v35  ;;  %v3278_v62 = vld [vmem:[%s4389_s1 + $0x90] sm:$0xff]   ;;  %v3283_v32 = vld [vmem:[%s4389_s1 + $0xb8] sm:$0xff]  }
  0x38   :  { %121 = vperm.xlu1 %3237, %v3528_v11   ;;  %118 = vperm.xlu0 %3236, %v3533_v12   ;;  %v3282_v16 = vld [vmem:[%s4389_s1 + $0xb0] sm:$0xff]  }
  0x39   :  { %2934 = vmatprep.subr.bf16.mxu0 %v3264_v19 }
  0x3a   :  { %2883 = vmatpush3.bf16.msra.mxu1 %v3270_v35 }
  0x3b   :  { %2935 = vmatpush3.bf16.msra.mxu0 %v3264_v19  ;;  %2884 = vmatprep.subr.bf16.mxu1 %v3271_v38 }
  0x3c   :  { %127 = vperm.xlu1 %3237, %v3538_v13   ;;  %124 = vperm.xlu0 %3236, %v3548_v15  }
  0x3d   :  { %2936 = vmatprep.subr.bf16.mxu0 %v3265_v22 }
  0x3e   :  { %2885 = vmatpush3.bf16.msra.mxu1 %v3271_v38 }
  0x3f   :  { %2937 = vmatpush3.bf16.msra.mxu0 %v3265_v22  ;;  %2886 = vmatprep.subr.bf16.mxu1 %v3272_v41 }
  0x40   :  { %133 = vperm.xlu1 %3237, %v3556_v17   ;;  %130 = vperm.xlu0 %3236, %v3561_v18  }
  0x41   :  { %2938 = vmatprep.subr.bf16.mxu0 %v3266_v25 }
  0x42   :  { %2887 = vmatpush3.bf16.msra.mxu1 %v3272_v41 }
  0x43   :  { %2939 = vmatpush3.bf16.msra.mxu0 %v3266_v25  ;;  %2888 = vmatprep.subr.bf16.mxu1 %v3273_v43 }
  0x44   :  { %139 = vperm.xlu1 %3237, %v3571_v20   ;;  %136 = vperm.xlu0 %3236, %v3576_v21  }
  0x45   :  { %2940 = vmatprep.subr.bf16.mxu0 %v3267_v28 }
  0x46   :  { %2889 = vmatpush3.bf16.msra.mxu1 %v3273_v43 }
  0x47   :  { %2941 = vmatpush3.bf16.msra.mxu0 %v3267_v28  ;;  %2890 = vmatprep.subr.bf16.mxu1 %v3274_v45 }
  0x48   :  { %145 = vperm.xlu1 %3237, %v3586_v23   ;;  %142 = vperm.xlu0 %3236, %v3591_v24  }
  0x49   :  { %2974 = vmatprep.subr.bf16.mxu0 %v3276_v51 }
  0x4a   :  { %2891 = vmatpush3.bf16.msra.mxu1 %v3274_v45 }
  0x4b   :  { %2892 = vmatprep.subr.bf16.mxu1 %v3275_v46 }
  0x4c   :  { %151 = vperm.xlu1 %3237, %v3601_v26   ;;  %148 = vperm.xlu0 %3236, %v3606_v27  }
  0x4e   :  { %2893 = vmatpush3.bf16.msra.mxu1 %v3275_v46 }
  0x50   :  { %157 = vperm.xlu1 %3237, %v3619_v30   ;;  %154 = vperm.xlu0 %3236, %v3624_v31  }
  0x54   :  { %163 = vperm.xlu1 %3237, %v3634_v33   ;;  %160 = vperm.xlu0 %3236, %v3639_v34  }
  0x58   :  { %169 = vperm.xlu1 %3237, %v3649_v36   ;;  %166 = vperm.xlu0 %3236, %v3656_v37  }
  0x5c   :  { %175 = vperm.xlu1 %3237, %v3666_v39   ;;  %172 = vperm.xlu0 %3236, %v3671_v40  }
  0x60   :  { %3238 = vset.pattern.permute.xlu1 %v3391_v44  ;;  %181 = vperm.xlu0 %3236, %v3681_v42  }
  0x61   :  { %321 = vperm.xlu1 %3238, %v3491_v4  }
  0x64   :  { %3240 = vset.pattern.permute.xlu0 %v3391_v44 }
  0x65   :  { %324 = vperm.xlu1 %3238, %v3474_v1   ;;  %318 = vperm.xlu0 %3240, %v3479_v2  }
  0x69   :  { %3239 = vset.pattern.permute.xlu1 %v3390_v0  ;;  %327 = vperm.xlu0 %3240, %v3486_v3  }
  0x6a   :  { %178 = vperm.xlu1 %3239, %v3701_v47  }
  0x6d   :  { %330 = vperm.xlu0 %3240, %v3503_v6  }
  0x6e   :  { %184 = vperm.xlu1 %3239, %v3709_v48  }
  0x71   :  { %339 = vperm.xlu0 %3240, %v3510_v7  }
  0x72   :  { %187 = vperm.xlu1 %3239, %v3716_v49  }
  0x75   :  { %342 = vperm.xlu0 %3240, %v3533_v12  }
  0x76   :  { %3241 = vset.pattern.permute.xlu1 %v3391_v44 }
  0x77   :  { %333 = vperm.xlu1 %3241, %v3498_v5  }
  0x79   :  { %351 = vperm.xlu0 %3240, %v3538_v13  }
  0x7b   :  { %336 = vperm.xlu1 %3241, %v3515_v8  }
  0x7d   :  { %354 = vperm.xlu0 %3240, %v3561_v18  }
  0x7f   :  { %3242 = vset.pattern.permute.xlu1 %v3392_v50 }
  0x80   :  { %961 = vperm.xlu1 %3242, %v3479_v2  }
  0x81   :  { %363 = vperm.xlu0 %3240, %v3571_v20  }
  0x84   :  { %967 = vperm.xlu1 %3242, %v3474_v1  }
  0x85   :  { %366 = vperm.xlu0 %3240, %v3591_v24  }
  0x88   :  { %970 = vperm.xlu1 %3242, %v3486_v3  }
  0x89   :  { %375 = vperm.xlu0 %3240, %v3601_v26  }
  0x8c   :  { %3243 = vset.pattern.permute.xlu1 %v3391_v44 }
  0x8d   :  { %345 = vperm.xlu1 %3243, %v3528_v11   ;;  %378 = vperm.xlu0 %3240, %v3624_v31  }
  0x91   :  { %348 = vperm.xlu1 %3243, %v3548_v15   ;;  %387 = vperm.xlu0 %3240, %v3634_v33  }
  0x95   :  { %3244 = vset.pattern.permute.xlu1 %v3392_v50  ;;  %390 = vperm.xlu0 %3240, %v3656_v37  }
  0x96   :  { %973 = vperm.xlu1 %3244, %v3503_v6   ;;  %v3279_v6 = vld [vmem:[%s4389_s1 + $0x98] sm:$0xff]  }
  0x99   :  { %399 = vperm.xlu0 %3240, %v3666_v39  }
  0x9a   :  { %979 = vperm.xlu1 %3244, %v3515_v8   ;;  %v3280_v8 = vld [vmem:[%s4389_s1 + $0xa0] sm:$0xff]  }
  0x9d   :  { %402 = vperm.xlu0 %3240, %v3701_v47  }
  0x9e   :  { %982 = vperm.xlu1 %3244, %v3510_v7  }
  0xa1   :  { %411 = vperm.xlu0 %3240, %v3716_v49  }
  0xa2   :  { %3245 = vset.pattern.permute.xlu1 %v3391_v44 }
  0xa3   :  { %357 = vperm.xlu1 %3245, %v3556_v17  }
  0xa5   :  { %3254 = vset.pattern.permute.xlu0 %v3392_v50 }
  0xa6   :  { %964 = vperm.xlu0 %3254, %v3491_v4  }
  0xa7   :  { %v101_v53 = vpop.permute.xlu1 %100  ;;  %360 = vperm.xlu1 %3245, %v3576_v21   ;;  %v95_v54 = vpop.permute.xlu0 %94 }
  0xa8   :  { %vm189_vm0 = vcmp.eq.s32.totalorder %v3754_v55, %v95_v54  ;;  %vm191_vm1 = vcmp.eq.s32.totalorder %v3754_v55, %v101_v53 }
  0xaa   :  { %976 = vperm.xlu0 %3254, %v3498_v5  }
  0xab   :  { %v104_v56 = vpop.permute.xlu1 %103  ;;  %3246 = vset.pattern.permute.xlu1 %v3392_v50  ;;  %v98_v57 = vpop.permute.xlu0 %97 }
  0xac   :  { %vm192_vm2 = vcmp.eq.s32.totalorder %v3754_v55, %v104_v56  ;;  %985 = vperm.xlu1 %3246, %v3533_v12   ;;  %vm190_vm3 = vcmp.eq.s32.totalorder %v3754_v55, %v98_v57 }
  0xad   :  { %vm2539_vm4 = vmpackc.low %vm192_vm2, %vm191_vm1 }
  0xae   :  { %988 = vperm.xlu0 %3254, %v3528_v11   ;;  %vm2537_vm5 = vmpackc.low %vm190_vm3, %vm189_vm0 }
  0xaf   :  { %2942 = vmatprep.mubr.msk.bf16.mxu0 %vm2537_vm5, %v3393_v58  ;;  %v110_v59 = vpop.permute.xlu1 %109  ;;  %v107_v60 = vpop.permute.xlu0 %106 }
  0xb0   :  { %vm194_vm6 = vcmp.eq.s32.totalorder %v3754_v55, %v110_v59  ;;  %2943 = vmatmul.mubr.msk.bf16.vlgmr.msra.gmra.mrb[0].mxu0 %vm2539_vm4, %v3393_v58  ;;  %vm193_vm7 = vcmp.eq.s32.totalorder %v3754_v55, %v107_v60  ;;  %991 = vperm.xlu1 %3246, %v3548_v15   ;;  %v3281_v15 = vld [vmem:[%s4389_s1 + $0xa8] sm:$0xff]  }
  0xb1   :  { %vm2541_vm8 = vmpackc.low %vm194_vm6, %vm193_vm7  ;;  %2975 = vmatpush3.bf16.msra.mxu0 %v3276_v51 }
  0xb2   :  { %2946 = vmatprep.mubr.msk.bf16.mxu0 %vm2541_vm8, %v3393_v58  ;;  %1000 = vperm.xlu0 %3254, %v3556_v17  }
  0xb3   :  { %v116_v63 = vpop.permute.xlu1 %115  ;;  %v113_v0 = vpop.permute.xlu0 %112  ;;  %2976 = vmatprep.subr.bf16.mxu0 %v3277_v61 }
  0xb4   :  { %vm196_vm9 = vcmp.eq.s32.totalorder %v3754_v55, %v116_v63  ;;  %vm195_vm10 = vcmp.eq.s32.totalorder %v3754_v55, %v113_v0  ;;  %994 = vperm.xlu1 %3246, %v3538_v13  }
  0xb5   :  { %vm2543_vm11 = vmpackc.low %vm196_vm9, %vm195_vm10  ;;  %2977 = vmatpush3.bf16.msra.mxu0 %v3277_v61  ;;  %v3893_v61 = vld [vmem:[%s4389_s1 + $0xc8] sm:$0xff]  }
  0xb6   :  { %1012 = vperm.xlu0 %3254, %v3586_v23   ;;  %2978 = vmatprep.subr.bf16.mxu0 %v3278_v62 }
  0xb7   :  { %v122_v1 = vpop.permute.xlu1 %121  ;;  %v119_v2 = vpop.permute.xlu0 %118 }
  0xb8   :  { %vm198_vm12 = vcmp.eq.s32.totalorder %v3754_v55, %v122_v1  ;;  %2947 = vmatmul.mubr.msk.bf16.gmra.mrb[4].mxu0 %vm2543_vm11, %v3393_v58  ;;  %vm197_vm13 = vcmp.eq.s32.totalorder %v3754_v55, %v119_v2  ;;  %3247 = vset.pattern.permute.xlu1 %v3391_v44 }
  0xb9   :  { %vm2545_vm14 = vmpackc.low %vm198_vm12, %vm197_vm13  ;;  %369 = vperm.xlu1 %3247, %v3586_v23   ;;  %2979 = vmatpush3.bf16.msra.mxu0 %v3278_v62 }
  0xba   :  { %2950 = vmatprep.mubr.msk.bf16.mxu0 %vm2545_vm14, %v3393_v58  ;;  %1024 = vperm.xlu0 %3254, %v3619_v30  }
  0xbb   :  { %v128_v9 = vpop.permute.xlu1 %127  ;;  %v125_v10 = vpop.permute.xlu0 %124  ;;  %2980 = vmatprep.subr.bf16.mxu0 %v3279_v6 }
  0xbc   :  { %vm200_vm15 = vcmp.eq.s32.totalorder %v3754_v55, %v128_v9  ;;  %vm199_vm0 = vcmp.eq.s32.totalorder %v3754_v55, %v125_v10 }
  0xbd   :  { %vm2547_vm1 = vmpackc.low %vm200_vm15, %vm199_vm0  ;;  %372 = vperm.xlu1 %3247, %v3606_v27   ;;  %2981 = vmatpush3.bf16.msra.mxu0 %v3279_v6 }
  0xbe   :  { %1036 = vperm.xlu0 %3254, %v3649_v36   ;;  %2982 = vmatprep.subr.bf16.mxu0 %v3280_v8 }
  0xbf   :  { %v134_v12 = vpop.permute.xlu1 %133  ;;  %v131_v14 = vpop.permute.xlu0 %130 }
  0xc0   :  { %vm202_vm2 = vcmp.eq.s32.totalorder %v3754_v55, %v134_v12  ;;  %2951 = vmatmul.mubr.msk.bf16.gmra.mrb[8].mxu0 %vm2547_vm1, %v3393_v58  ;;  %vm201_vm3 = vcmp.eq.s32.totalorder %v3754_v55, %v131_v14  ;;  %v3953_v12 = vld [vmem:[%s4389_s1 + $0xf0] sm:$0xff]  }
  0xc1   :  { %vm2549_vm4 = vmpackc.low %vm202_vm2, %vm201_vm3  ;;  %3248 = vset.pattern.permute.xlu1 %v3392_v50  ;;  %2983 = vmatpush3.bf16.msra.mxu0 %v3280_v8  ;;  %v3941_v8 = vld [vmem:[%s4389_s1 + $0xe8] sm:$0xff]  }
  0xc2   :  { %997 = vperm.xlu1 %3248, %v3561_v18   ;;  %2954 = vmatprep.mubr.msk.bf16.mxu0 %vm2549_vm4, %v3393_v58 }
  0xc3   :  { %v140_v19 = vpop.permute.xlu1 %139  ;;  %v137_v22 = vpop.permute.xlu0 %136  ;;  %1048 = vperm.xlu0 %3254, %v3681_v42   ;;  %2984 = vmatprep.subr.bf16.mxu0 %v3281_v15 }
  0xc4   :  { %vm204_vm5 = vcmp.eq.s32.totalorder %v3754_v55, %v140_v19  ;;  %vm203_vm6 = vcmp.eq.s32.totalorder %v3754_v55, %v137_v22 }
  0xc5   :  { %vm2551_vm7 = vmpackc.low %vm204_vm5, %vm203_vm6  ;;  %2985 = vmatpush3.bf16.msra.mxu0 %v3281_v15  ;;  %v3967_v15 = vld [vmem:[%s4389_s1 + $0xf8] sm:$0xff]  }
  0xc6   :  { %1003 = vperm.xlu1 %3248, %v3576_v21   ;;  %2986 = vmatprep.subr.bf16.mxu0 %v3282_v16 }
  0xc7   :  { %v146_v25 = vpop.permute.xlu1 %145  ;;  %v143_v28 = vpop.permute.xlu0 %142  ;;  %3258 = vset.pattern.permute.xlu0 %v3394_v29 }
  0xc8   :  { %vm206_vm8 = vcmp.eq.s32.totalorder %v3754_v55, %v146_v25  ;;  %2955 = vmatmul.mubr.msk.bf16.gmra.mrb[12].mxu0 %vm2551_vm7, %v3393_v58  ;;  %vm205_vm9 = vcmp.eq.s32.totalorder %v3754_v55, %v143_v28  ;;  %1463 = vperm.xlu0 %3258, %v3561_v18  }
  0xc9   :  { %vm2553_vm10 = vmpackc.low %vm206_vm8, %vm205_vm9  ;;  %2987 = vmatpush3.bf16.msra.mxu0 %v3282_v16 }
  0xca   :  { %1006 = vperm.xlu1 %3248, %v3571_v20   ;;  %2958 = vmatprep.mubr.msk.bf16.mxu0 %vm2553_vm10, %v3393_v58 }
  0xcb   :  { %v152_v35 = vpop.permute.xlu1 %151  ;;  %v149_v38 = vpop.permute.xlu0 %148  ;;  %2988 = vmatprep.subr.bf16.mxu0 %v3283_v32 }
  0xcc   :  { %vm208_vm11 = vcmp.eq.s32.totalorder %v3754_v55, %v152_v35  ;;  %vm207_vm12 = vcmp.eq.s32.totalorder %v3754_v55, %v149_v38  ;;  %1472 = vperm.xlu0 %3258, %v3571_v20   ;;  %v3308_v38 = vld [vmem:[%s4388_s0] sm:$0xff] }
  0xcd   :  { %vm2555_vm13 = vmpackc.low %vm208_vm11, %vm207_vm12  ;;  %2989 = vmatpush3.bf16.msra.mxu0 %v3283_v32 }
  0xce   :  { %3249 = vset.pattern.permute.xlu1 %v3391_v44 }
  0xcf   :  { %v158_v18 = vpop.permute.xlu1 %157  ;;  %381 = vperm.xlu1 %3249, %v3619_v30   ;;  %v155_v41 = vpop.permute.xlu0 %154 }
  0xd0   :  { %vm210_vm14 = vcmp.eq.s32.totalorder %v3754_v55, %v158_v18  ;;  %2959 = vmatmul.mubr.msk.bf16.gmra.mrb[16].mxu0 %vm2555_vm13, %v3393_v58  ;;  %vm209_vm15 = vcmp.eq.s32.totalorder %v3754_v55, %v155_v41  ;;  %1475 = vperm.xlu0 %3258, %v3591_v24   ;;  %v3309_v18 = vld [vmem:[%s4388_s0 + $0x10] sm:$0xff] }
  0xd1   :  { %vm2557_vm0 = vmpackc.low %vm210_vm14, %vm209_vm15 }
  0xd2   :  { %2962 = vmatprep.mubr.msk.bf16.mxu0 %vm2557_vm0, %v3393_v58 }
  0xd3   :  { %v164_v20 = vpop.permute.xlu1 %163  ;;  %384 = vperm.xlu1 %3249, %v3639_v34   ;;  %v161_v43 = vpop.permute.xlu0 %160 }
  0xd4   :  { %vm212_vm1 = vcmp.eq.s32.totalorder %v3754_v55, %v164_v20  ;;  %vm211_vm2 = vcmp.eq.s32.totalorder %v3754_v55, %v161_v43  ;;  %1484 = vperm.xlu0 %3258, %v3601_v26  }
  0xd5   :  { %vm2559_vm3 = vmpackc.low %vm212_vm1, %vm211_vm2 }
  0xd7   :  { %v170_v45 = vpop.permute.xlu1 %169  ;;  %3250 = vset.pattern.permute.xlu1 %v3392_v50  ;;  %v167_v46 = vpop.permute.xlu0 %166 }
  0xd8   :  { %vm214_vm4 = vcmp.eq.s32.totalorder %v3754_v55, %v170_v45  ;;  %2963 = vmatmul.mubr.msk.bf16.gmra.mrb[20].mxu0 %vm2559_vm3, %v3393_v58  ;;  %vm213_vm5 = vcmp.eq.s32.totalorder %v3754_v55, %v167_v46  ;;  %1009 = vperm.xlu1 %3250, %v3591_v24   ;;  %v3310_v45 = vld [vmem:[%s4388_s0 + $0x20] sm:$0xff]  ;;  %v3311_v46 = vld [vmem:[%s4388_s0 + $0x30] sm:$0xff] }
  0xd9   :  { %vm2561_vm6 = vmpackc.low %vm214_vm4, %vm213_vm5  ;;  %1430 = vperm.xlu0 %3258, %v3491_v4  }
  0xda   :  { %2966 = vmatprep.mubr.msk.bf16.mxu0 %vm2561_vm6, %v3393_v58 }
  0xdb   :  { %v176_v51 = vpop.permute.xlu1 %175  ;;  %v173_v52 = vpop.permute.xlu0 %172 }
  0xdc   :  { %vm216_vm7 = vcmp.eq.s32.totalorder %v3754_v55, %v176_v51  ;;  %vm215_vm8 = vcmp.eq.s32.totalorder %v3754_v55, %v173_v52  ;;  %1015 = vperm.xlu1 %3250, %v3606_v27  }
  0xdd   :  { %vm2563_vm9 = vmpackc.low %vm216_vm7, %vm215_vm8  ;;  %1436 = vperm.xlu0 %3258, %v3486_v3  }
  0xdf   :  { %v182_v53 = vpop.permute.xlu0 %181 }
  0xe0   :  { %2967 = vmatmul.mubr.msk.bf16.gmra.mrb[24].mxu0 %vm2563_vm9, %v3393_v58  ;;  %v322_v24 = vpop.permute.xlu1 %321  ;;  %1018 = vperm.xlu1 %3250, %v3601_v26   ;;  %vm218_vm13 = vcmp.eq.s32.totalorder %v3754_v55, %v182_v53 }
  0xe1   :  { %1490 = vperm.xlu0 %3258, %v3619_v30   ;;  %vm414_vm11 = vcmp.eq.s32.totalorder %v3754_v55, %v322_v24 }
  0xe4   :  { %v325_v4 = vpop.permute.xlu1 %324  ;;  %3251 = vset.pattern.permute.xlu1 %v3391_v44  ;;  %v319_v54 = vpop.permute.xlu0 %318 }
  0xe5   :  { %vm413_vm10 = vcmp.eq.s32.totalorder %v3754_v55, %v319_v54  ;;  %393 = vperm.xlu1 %3251, %v3649_v36   ;;  %1496 = vperm.xlu0 %3258, %v3634_v33   ;;  %vm415_vm14 = vcmp.eq.s32.totalorder %v3754_v55, %v325_v4 }
  0xe6   :  { %vm2497_vm12 = vmpackc.low %vm414_vm11, %vm413_vm10 }
  0xe7   :  { %2894 = vmatprep.mubr.msk.bf16.mxu1 %vm2497_vm12, %v3393_v58 }
  0xe8   :  { %v328_v3 = vpop.permute.xlu0 %327 }
  0xe9   :  { %vm416_vm15 = vcmp.eq.s32.totalorder %v3754_v55, %v328_v3  ;;  %v179_v26 = vpop.permute.xlu1 %178  ;;  %396 = vperm.xlu1 %3251, %v3671_v40   ;;  %1442 = vperm.xlu0 %3258, %v3498_v5  }
  0xea   :  { %vm2499_vm0 = vmpackc.low %vm416_vm15, %vm415_vm14  ;;  %vm217_vm1 = vcmp.eq.s32.totalorder %v3754_v55, %v179_v26 }
  0xeb   :  { %vm2565_vm2 = vmpackc.low %vm218_vm13, %vm217_vm1  ;;  %2895 = vmatmul.mubr.msk.bf16.vlgmr.msra.gmra.mrb[0].mxu1 %vm2499_vm0, %v3393_v58 }
  0xec   :  { %2970 = vmatprep.mubr.msk.bf16.mxu0 %vm2565_vm2, %v3393_v58  ;;  %v331_v30 = vpop.permute.xlu0 %330 }
  0xed   :  { %v185_v56 = vpop.permute.xlu1 %184  ;;  %3252 = vset.pattern.permute.xlu1 %v3392_v50  ;;  %1448 = vperm.xlu0 %3258, %v3510_v7   ;;  %vm417_vm6 = vcmp.eq.s32.totalorder %v3754_v55, %v331_v30 }
  0xee   :  { %1021 = vperm.xlu1 %3252, %v3624_v31   ;;  %vm219_vm3 = vcmp.eq.s32.totalorder %v3754_v55, %v185_v56 }
  0xf0   :  { %v340_v57 = vpop.permute.xlu0 %339 }
  0xf1   :  { %v188_v59 = vpop.permute.xlu1 %187  ;;  %1502 = vperm.xlu0 %3258, %v3649_v36   ;;  %v3880_v36 = vld [vmem:[%s4389_s1 + $0xc0] sm:$0xff]   ;;  %vm420_vm9 = vcmp.eq.s32.totalorder %v3754_v55, %v340_v57 }
  0xf2   :  { %vm220_vm4 = vcmp.eq.s32.totalorder %v3754_v55, %v188_v59  ;;  %1027 = vperm.xlu1 %3252, %v3639_v34   ;;  %3110 = vmatprep.subr.bf16.mxu1 %v3880_v36 }
  0xf3   :  { %vm2567_vm5 = vmpackc.low %vm220_vm4, %vm219_vm3  ;;  %3022 = vmatprep.subr.bf16.mxu0 %v3880_v36  ;;  %3118 = vmatpush3.bf16.msra.mxu1 %v3880_v36 }
  0xf4   :  { %2971 = vmatmul.mubr.msk.bf16.gmra.mrb[28].mxu0 %vm2567_vm5, %v3393_v58  ;;  %v343_v5 = vpop.permute.xlu0 %342  ;;  %3111 = vmatprep.subr.bf16.mxu1 %v3893_v61 }
  0xf5   :  { %1508 = vperm.xlu0 %3258, %v3666_v39   ;;  %vm421_vm12 = vcmp.eq.s32.totalorder %v3754_v55, %v343_v5 }
  0xf6   :  { %v334_v7 = vpop.permute.xlu1 %333  ;;  %1030 = vperm.xlu1 %3252, %v3634_v33  }
  0xf7   :  { %vm418_vm7 = vcmp.eq.s32.totalorder %v3754_v55, %v334_v7  ;;  %3119 = vmatpush3.bf16.msra.mxu1 %v3893_v61 }
  0xf8   :  { %vm2501_vm8 = vmpackc.low %vm418_vm7, %vm417_vm6  ;;  %v352_v60 = vpop.permute.xlu0 %351 }
  0xf9   :  { %2898 = vmatprep.mubr.msk.bf16.mxu1 %vm2501_vm8, %v3393_v58  ;;  %1454 = vperm.xlu0 %3258, %v3528_v11   ;;  %v3906_v11 = vld [vmem:[%s4389_s1 + $0xd0] sm:$0xff]   ;;  %vm424_vm15 = vcmp.eq.s32.totalorder %v3754_v55, %v352_v60 }
  0xfa   :  { %v337_v33 = vpop.permute.xlu1 %336  ;;  %3253 = vset.pattern.permute.xlu1 %v3391_v44  ;;  %3112 = vmatprep.subr.bf16.mxu1 %v3906_v11 }
  0xfb   :  { %vm419_vm10 = vcmp.eq.s32.totalorder %v3754_v55, %v337_v33  ;;  %405 = vperm.xlu1 %3253, %v3681_v42   ;;  %3120 = vmatpush3.bf16.msra.mxu1 %v3906_v11 }
  0xfc   :  { %vm2503_vm11 = vmpackc.low %vm420_vm9, %vm419_vm10  ;;  %v3897_v62 = vpop.permute.xlu0 %354 }
  0xfd   :  { %2899 = vmatmul.mubr.msk.bf16.gmra.mrb[4].mxu1 %vm2503_vm11, %v3393_v58  ;;  %1460 = vperm.xlu0 %3258, %v3538_v13   ;;  %v3919_v13 = vld [vmem:[%s4389_s1 + $0xd8] sm:$0xff]   ;;  %vm425_vm2 = vcmp.eq.s32.totalorder %v3754_v55, %v3897_v62 }
  0xfe   :  { %3113 = vmatprep.subr.bf16.mxu1 %v3919_v13 }
  0xff   :  { %408 = vperm.xlu1 %3253, %v3709_v48   ;;  %v3909_v44 = vpop.permute.xlu1 %961  ;;  %3121 = vmatpush3.bf16.msra.mxu1 %v3919_v13 }
 0x100   :  { %v3911_v63 = vpop.permute.xlu0 %363  ;;  %vm1056_vm8 = vcmp.eq.s32.totalorder %v3754_v55, %v3909_v44 }
 0x101   :  { %1514 = vperm.xlu0 %3258, %v3681_v42   ;;  %v3931_v42 = vld [vmem:[%s4389_s1 + $0xe0] sm:$0xff]   ;;  %vm428_vm6 = vcmp.eq.s32.totalorder %v3754_v55, %v3911_v63 }
 0x102   :  { %3114 = vmatprep.subr.bf16.mxu1 %v3931_v42 }
 0x103   :  { %3255 = vset.pattern.permute.xlu1 %v3392_v50  ;;  %v968_v0 = vpop.permute.xlu1 %967  ;;  %3122 = vmatpush3.bf16.msra.mxu1 %v3931_v42 }
 0x104   :  { %1033 = vperm.xlu1 %3255, %v3656_v37   ;;  %v3923_v1 = vpop.permute.xlu0 %366  ;;  %3115 = vmatprep.subr.bf16.mxu1 %v3941_v8  ;;  %vm1058_vm7 = vcmp.eq.s32.totalorder %v3754_v55, %v968_v0 }
 0x105   :  { %1520 = vperm.xlu0 %3258, %v3716_v49  }
 0x107   :  { %v971_v2 = vpop.permute.xlu1 %970  ;;  %3123 = vmatpush3.bf16.msra.mxu1 %v3941_v8 }
 0x108   :  { %1039 = vperm.xlu1 %3255, %v3671_v40   ;;  %v3934_v6 = vpop.permute.xlu0 %375  ;;  %3116 = vmatprep.subr.bf16.mxu1 %v3953_v12  ;;  %vm1059_vm3 = vcmp.eq.s32.totalorder %v3754_v55, %v971_v2 }
 0x109   :  { %vm2627_vm9 = vmpackc.low %vm1059_vm3, %vm1058_vm7 }
 0x10b   :  { %3124 = vmatpush3.bf16.msra.mxu1 %v3953_v12 }
 0x10c   :  { %1042 = vperm.xlu1 %3255, %v3666_v39   ;;  %v346_v9 = vpop.permute.xlu1 %345  ;;  %v3945_v10 = vpop.permute.xlu0 %378  ;;  %3117 = vmatprep.subr.bf16.mxu1 %v3967_v15 }
 0x10d   :  { %vm422_vm13 = vcmp.eq.s32.totalorder %v3754_v55, %v346_v9 }
 0x10e   :  { %vm2505_vm14 = vmpackc.low %vm422_vm13, %vm421_vm12 }
 0x10f   :  { %2902 = vmatprep.mubr.msk.bf16.mxu1 %vm2505_vm14, %v3393_v58  ;;  %3125 = vmatpush3.bf16.msra.mxu1 %v3967_v15 }
 0x110   :  { %3256 = vset.pattern.permute.xlu1 %v3394_v29  ;;  %v349_v39 = vpop.permute.xlu1 %348  ;;  %v3958_v14 = vpop.permute.xlu0 %387 }
 0x111   :  { %vm423_vm0 = vcmp.eq.s32.totalorder %v3754_v55, %v349_v39  ;;  %1466 = vperm.xlu1 %3256, %v3556_v17  }
 0x112   :  { %vm2507_vm1 = vmpackc.low %vm424_vm15, %vm423_vm0 }
 0x113   :  { %2903 = vmatmul.mubr.msk.bf16.gmra.mrb[8].mxu1 %vm2507_vm1, %v3393_v58 }
 0x114   :  { %v3970_v16 = vpop.permute.xlu0 %390 }
 0x115   :  { %1469 = vperm.xlu1 %3256, %v3576_v21   ;;  %v974_v19 = vpop.permute.xlu1 %973 }
 0x116   :  { %vm1060_vm14 = vcmp.eq.s32.totalorder %v3754_v55, %v974_v19 }
 0x118   :  { %v3975_v17 = vpop.permute.xlu0 %399 }
 0x119   :  { %3257 = vset.pattern.permute.xlu1 %v3392_v50  ;;  %v980_v22 = vpop.permute.xlu1 %979 }
 0x11a   :  { %1045 = vperm.xlu1 %3257, %v3701_v47   ;;  %vm1062_vm3 = vcmp.eq.s32.totalorder %v3754_v55, %v980_v22 }
 0x11c   :  { %v3979_v25 = vpop.permute.xlu0 %402 }
 0x11d   :  { %v983_v28 = vpop.permute.xlu1 %982 }
 0x11e   :  { %1051 = vperm.xlu1 %3257, %v3709_v48   ;;  %vm1063_vm1 = vcmp.eq.s32.totalorder %v3754_v55, %v983_v28 }
 0x120   :  { %v3982_v32 = vpop.permute.xlu0 %411 }
 0x122   :  { %1054 = vperm.xlu1 %3257, %v3716_v49   ;;  %v358_v21 = vpop.permute.xlu1 %357 }
 0x123   :  { %vm426_vm4 = vcmp.eq.s32.totalorder %v3754_v55, %v358_v21 }
 0x124   :  { %vm2509_vm5 = vmpackc.low %vm426_vm4, %vm425_vm2 }
 0x125   :  { %2906 = vmatprep.mubr.msk.bf16.mxu1 %vm2509_vm5, %v3393_v58  ;;  %v965_v50 = vpop.permute.xlu0 %964  ;;  %vm2631_vm4 = vmpackc.low %vm1063_vm1, %vm1062_vm3 }
 0x126   :  { %vm1057_vm10 = vcmp.eq.s32.totalorder %v3754_v55, %v965_v50  ;;  %3259 = vset.pattern.permute.xlu1 %v3394_v29  ;;  %v361_v49 = vpop.permute.xlu1 %360 }
 0x127   :  { %vm2625_vm11 = vmpackc.low %vm1057_vm10, %vm1056_vm8  ;;  %vm427_vm12 = vcmp.eq.s32.totalorder %v3754_v55, %v361_v49  ;;  %1478 = vperm.xlu1 %3259, %v3586_v23   ;;  %vm429_vm8 = vcmp.eq.s32.totalorder %v3754_v55, %v3923_v1 }
 0x128   :  { %vm2511_vm13 = vmpackc.low %vm428_vm6, %vm427_vm12  ;;  %2990 = vmatprep.mubr.msk.bf16.mxu0 %vm2625_vm11, %v3393_v58 }
 0x129   :  { %2907 = vmatmul.mubr.msk.bf16.gmra.mrb[12].mxu1 %vm2511_vm13, %v3393_v58  ;;  %2991 = vmatmul.mubr.msk.bf16.vlgmr.msra.gmra.mrb[0].mxu0 %vm2627_vm9, %v3393_v58  ;;  %v977_v35 = vpop.permute.xlu0 %976  ;;  %vm432_vm13 = vcmp.eq.s32.totalorder %v3754_v55, %v3934_v6 }
 0x12a   :  { %vm1061_vm15 = vcmp.eq.s32.totalorder %v3754_v55, %v977_v35  ;;  %3023 = vmatpush3.bf16.msra.mxu0 %v3880_v36 }
 0x12b   :  { %vm2629_vm0 = vmpackc.low %vm1061_vm15, %vm1060_vm14  ;;  %1481 = vperm.xlu1 %3259, %v3606_v27   ;;  %v986_v29 = vpop.permute.xlu1 %985  ;;  %3024 = vmatprep.subr.bf16.mxu0 %v3893_v61 }
 0x12c   :  { %2994 = vmatprep.mubr.msk.bf16.mxu0 %vm2629_vm0, %v3393_v58  ;;  %vm1064_vm5 = vcmp.eq.s32.totalorder %v3754_v55, %v986_v29 }
 0x12d   :  { %v989_v23 = vpop.permute.xlu0 %988 }
 0x12e   :  { %vm1065_vm2 = vcmp.eq.s32.totalorder %v3754_v55, %v989_v23  ;;  %3025 = vmatpush3.bf16.msra.mxu0 %v3893_v61 }
 0x12f   :  { %1427 = vperm.xlu1 %3259, %v3308_v38   ;;  %v992_v27 = vpop.permute.xlu1 %991  ;;  %3026 = vmatprep.subr.bf16.mxu0 %v3906_v11  ;;  %vm2633_vm6 = vmpackc.low %vm1065_vm2, %vm1064_vm5 }
 0x130   :  { %vm1066_vm9 = vcmp.eq.s32.totalorder %v3754_v55, %v992_v27 }
 0x131   :  { %2995 = vmatmul.mubr.msk.bf16.gmra.mrb[4].mxu0 %vm2631_vm4, %v3393_v58 }
 0x132   :  { %2998 = vmatprep.mubr.msk.bf16.mxu0 %vm2633_vm6, %v3393_v58  ;;  %3027 = vmatpush3.bf16.msra.mxu0 %v3906_v11  ;;  %vm433_vm6 = vcmp.eq.s32.totalorder %v3754_v55, %v3945_v10 }
 0x133   :  { %1433 = vperm.xlu1 %3259, %v3309_v18   ;;  %v995_v41 = vpop.permute.xlu1 %994  ;;  %3028 = vmatprep.subr.bf16.mxu0 %v3919_v13 }
 0x134   :  { %vm1067_vm7 = vcmp.eq.s32.totalorder %v3754_v55, %v995_v41 }
 0x135   :  { %vm2635_vm10 = vmpackc.low %vm1067_vm7, %vm1066_vm9  ;;  %vm436_vm9 = vcmp.eq.s32.totalorder %v3754_v55, %v3958_v14 }
 0x136   :  { %3029 = vmatpush3.bf16.msra.mxu0 %v3919_v13 }
 0x137   :  { %1487 = vperm.xlu1 %3259, %v3624_v31   ;;  %3030 = vmatprep.subr.bf16.mxu0 %v3931_v42  ;;  %v1001_v31 = vpop.permute.xlu0 %1000 }
 0x138   :  { %v370_v20 = vpop.permute.xlu1 %369  ;;  %vm1069_vm0 = vcmp.eq.s32.totalorder %v3754_v55, %v1001_v31 }
 0x139   :  { %vm430_vm11 = vcmp.eq.s32.totalorder %v3754_v55, %v370_v20  ;;  %2999 = vmatmul.mubr.msk.bf16.gmra.mrb[8].mxu0 %vm2635_vm10, %v3393_v58 }
 0x13a   :  { %vm2513_vm12 = vmpackc.low %vm430_vm11, %vm429_vm8  ;;  %3031 = vmatpush3.bf16.msra.mxu0 %v3931_v42 }
 0x13b   :  { %1493 = vperm.xlu1 %3259, %v3639_v34   ;;  %2910 = vmatprep.mubr.msk.bf16.mxu1 %vm2513_vm12, %v3393_v58  ;;  %v1013_v4 = vpop.permute.xlu0 %1012 }
 0x13c   :  { %v373_v43 = vpop.permute.xlu1 %372  ;;  %3032 = vmatprep.subr.bf16.mxu0 %v3941_v8  ;;  %vm1073_vm12 = vcmp.eq.s32.totalorder %v3754_v55, %v1013_v4 }
 0x13d   :  { %vm431_vm14 = vcmp.eq.s32.totalorder %v3754_v55, %v373_v43 }
 0x13e   :  { %vm2515_vm15 = vmpackc.low %vm432_vm13, %vm431_vm14  ;;  %3033 = vmatpush3.bf16.msra.mxu0 %v3941_v8 }
 0x13f   :  { %1439 = vperm.xlu1 %3259, %v3310_v45   ;;  %2911 = vmatmul.mubr.msk.bf16.gmra.mrb[16].mxu1 %vm2515_vm15, %v3393_v58 }
 0x140   :  { %3034 = vmatprep.subr.bf16.mxu0 %v3953_v12 }
 0x141   :  { %v998_v34 = vpop.permute.xlu1 %997 }
 0x142   :  { %vm1068_vm1 = vcmp.eq.s32.totalorder %v3754_v55, %v998_v34  ;;  %3035 = vmatpush3.bf16.msra.mxu0 %v3953_v12 }
 0x143   :  { %vm2637_vm2 = vmpackc.low %vm1069_vm0, %vm1068_vm1  ;;  %1445 = vperm.xlu1 %3259, %v3311_v46   ;;  %3036 = vmatprep.subr.bf16.mxu0 %v3967_v15 }
 0x144   :  { %3002 = vmatprep.mubr.msk.bf16.mxu0 %vm2637_vm2, %v3393_v58  ;;  %vm437_vm2 = vcmp.eq.s32.totalorder %v3754_v55, %v3970_v16 }
 0x145   :  { %v1004_v51 = vpop.permute.xlu1 %1003 }
 0x146   :  { %3037 = vmatpush3.bf16.msra.mxu0 %v3967_v15  ;;  %vm1070_vm3 = vcmp.eq.s32.totalorder %v3754_v55, %v1004_v51 }
 0x147   :  { %1499 = vperm.xlu1 %3259, %v3656_v37   ;;  %v3312_v37 = vld [vmem:[%s4388_s0 + $0x40] sm:$0xff] }
 0x149   :  { %v1007_v52 = vpop.permute.xlu1 %1006 }
 0x14a   :  { %vm1071_vm4 = vcmp.eq.s32.totalorder %v3754_v55, %v1007_v52 }
 0x14b   :  { %vm2639_vm5 = vmpackc.low %vm1071_vm4, %vm1070_vm3  ;;  %1505 = vperm.xlu1 %3259, %v3671_v40   ;;  %v3313_v40 = vld [vmem:[%s4388_s0 + $0x50] sm:$0xff] }
 0x14c   :  { %3003 = vmatmul.mubr.msk.bf16.gmra.mrb[12].mxu0 %vm2639_vm5, %v3393_v58  ;;  %vm440_vm5 = vcmp.eq.s32.totalorder %v3754_v55, %v3975_v17 }
 0x14e   :  { %v382_v53 = vpop.permute.xlu1 %381 }
 0x14f   :  { %vm434_vm7 = vcmp.eq.s32.totalorder %v3754_v55, %v382_v53  ;;  %1451 = vperm.xlu1 %3259, %v3312_v37  }
 0x150   :  { %vm2517_vm8 = vmpackc.low %vm434_vm7, %vm433_vm6 }
 0x151   :  { %2914 = vmatprep.mubr.msk.bf16.mxu1 %vm2517_vm8, %v3393_v58 }
 0x152   :  { %v385_v24 = vpop.permute.xlu1 %384 }
 0x153   :  { %vm435_vm10 = vcmp.eq.s32.totalorder %v3754_v55, %v385_v24  ;;  %1457 = vperm.xlu1 %3259, %v3313_v40  }
 0x154   :  { %vm2519_vm11 = vmpackc.low %vm436_vm9, %vm435_vm10 }
 0x155   :  { %2915 = vmatmul.mubr.msk.bf16.gmra.mrb[20].mxu1 %vm2519_vm11, %v3393_v58 }
 0x157   :  { %1511 = vperm.xlu1 %3259, %v3701_v47   ;;  %v1010_v54 = vpop.permute.xlu1 %1009 }
 0x158   :  { %vm1072_vm13 = vcmp.eq.s32.totalorder %v3754_v55, %v1010_v54 }
 0x159   :  { %vm2641_vm14 = vmpackc.low %vm1073_vm12, %vm1072_vm13 }
 0x15a   :  { %3006 = vmatprep.mubr.msk.bf16.mxu0 %vm2641_vm14, %v3393_v58  ;;  %vm441_vm14 = vcmp.eq.s32.totalorder %v3754_v55, %v3979_v25 }
 0x15b   :  { %1517 = vperm.xlu1 %3259, %v3709_v48   ;;  %v1016_v3 = vpop.permute.xlu1 %1015  ;;  %v1025_v48 = vpop.permute.xlu0 %1024 }
 0x15c   :  { %vm1074_vm15 = vcmp.eq.s32.totalorder %v3754_v55, %v1016_v3  ;;  %vm1077_vm8 = vcmp.eq.s32.totalorder %v3754_v55, %v1025_v48 }
 0x15f   :  { %v1019_v26 = vpop.permute.xlu1 %1018  ;;  %v1037_v57 = vpop.permute.xlu0 %1036 }
 0x160   :  { %vm1075_vm0 = vcmp.eq.s32.totalorder %v3754_v55, %v1019_v26 }
 0x161   :  { %vm2643_vm1 = vmpackc.low %vm1075_vm0, %vm1074_vm15 }
 0x162   :  { %3007 = vmatmul.mubr.msk.bf16.gmra.mrb[16].mxu0 %vm2643_vm1, %v3393_v58  ;;  %vm444_vm1 = vcmp.eq.s32.totalorder %v3754_v55, %v3982_v32 }
 0x163   :  { %v1049_v7 = vpop.permute.xlu0 %1048 }
 0x164   :  { %v394_v30 = vpop.permute.xlu1 %393 }
 0x165   :  { %vm438_vm3 = vcmp.eq.s32.totalorder %v3754_v55, %v394_v30 }
 0x166   :  { %vm2521_vm4 = vmpackc.low %vm438_vm3, %vm437_vm2 }
 0x167   :  { %2918 = vmatprep.mubr.msk.bf16.mxu1 %vm2521_vm4, %v3393_v58  ;;  %v1464_v60 = vpop.permute.xlu0 %1463  ;;  %vm1081_vm4 = vcmp.eq.s32.totalorder %v3754_v55, %v1037_v57 }
 0x168   :  { %v397_v47 = vpop.permute.xlu1 %396 }
 0x169   :  { %vm439_vm6 = vcmp.eq.s32.totalorder %v3754_v55, %v397_v47 }
 0x16a   :  { %vm2523_vm7 = vmpackc.low %vm440_vm5, %vm439_vm6 }
 0x16b   :  { %2919 = vmatmul.mubr.msk.bf16.gmra.mrb[24].mxu1 %vm2523_vm7, %v3393_v58  ;;  %v1473_v61 = vpop.permute.xlu0 %1472 }
 0x16d   :  { %v1022_v56 = vpop.permute.xlu1 %1021 }
 0x16e   :  { %vm1076_vm9 = vcmp.eq.s32.totalorder %v3754_v55, %v1022_v56 }
 0x16f   :  { %vm2645_vm10 = vmpackc.low %vm1077_vm8, %vm1076_vm9  ;;  %v1476_v44 = vpop.permute.xlu0 %1475 }
 0x170   :  { %3010 = vmatprep.mubr.msk.bf16.mxu0 %vm2645_vm10, %v3393_v58  ;;  %vm1534_vm10 = vcmp.eq.s32.totalorder %v3754_v55, %v1464_v60 }
 0x171   :  { %v1028_v59 = vpop.permute.xlu1 %1027 }
 0x172   :  { %vm1078_vm11 = vcmp.eq.s32.totalorder %v3754_v55, %v1028_v59 }
 0x173   :  { %v1485_v13 = vpop.permute.xlu0 %1484 }
 0x175   :  { %v1031_v5 = vpop.permute.xlu1 %1030 }
 0x176   :  { %vm1079_vm12 = vcmp.eq.s32.totalorder %v3754_v55, %v1031_v5 }
 0x177   :  { %vm2647_vm13 = vmpackc.low %vm1079_vm12, %vm1078_vm11  ;;  %v1431_v42 = vpop.permute.xlu0 %1430 }
 0x178   :  { %3011 = vmatmul.mubr.msk.bf16.gmra.mrb[20].mxu0 %vm2647_vm13, %v3393_v58  ;;  %vm1537_vm13 = vcmp.eq.s32.totalorder %v3754_v55, %v1473_v61 }
 0x17a   :  { %v406_v36 = vpop.permute.xlu1 %405 }
 0x17b   :  { %vm442_vm15 = vcmp.eq.s32.totalorder %v3754_v55, %v406_v36  ;;  %v1437_v6 = vpop.permute.xlu0 %1436 }
 0x17c   :  { %vm2525_vm0 = vmpackc.low %vm442_vm15, %vm441_vm14 }
 0x17d   :  { %2922 = vmatprep.mubr.msk.bf16.mxu1 %vm2525_vm0, %v3393_v58  ;;  %vm1085_vm0 = vcmp.eq.s32.totalorder %v3754_v55, %v1049_v7 }
 0x17e   :  { %v409_v33 = vpop.permute.xlu1 %408 }
 0x17f   :  { %vm443_vm2 = vcmp.eq.s32.totalorder %v3754_v55, %v409_v33  ;;  %v1491_v9 = vpop.permute.xlu0 %1490 }
 0x180   :  { %vm2527_vm3 = vmpackc.low %vm444_vm1, %vm443_vm2 }
 0x181   :  { %2923 = vmatmul.mubr.msk.bf16.gmra.mrb[28].mxu1 %vm2527_vm3, %v3393_v58 }
 0x183   :  { %v1034_v62 = vpop.permute.xlu1 %1033  ;;  %v1497_v39 = vpop.permute.xlu0 %1496 }
 0x184   :  { %vm1080_vm5 = vcmp.eq.s32.totalorder %v3754_v55, %v1034_v62 }
 0x185   :  { %vm2649_vm6 = vmpackc.low %vm1081_vm4, %vm1080_vm5 }
 0x186   :  { %3014 = vmatprep.mubr.msk.bf16.mxu0 %vm2649_vm6, %v3393_v58  ;;  %vm1538_vm6 = vcmp.eq.s32.totalorder %v3754_v55, %v1476_v44 }
 0x187   :  { %v1040_v11 = vpop.permute.xlu1 %1039  ;;  %v1443_v15 = vpop.permute.xlu0 %1442 }
 0x188   :  { %vm1082_vm7 = vcmp.eq.s32.totalorder %v3754_v55, %v1040_v11 }
 0x18b   :  { %v1043_v63 = vpop.permute.xlu1 %1042  ;;  %v1449_v17 = vpop.permute.xlu0 %1448 }
 0x18c   :  { %vm1083_vm8 = vcmp.eq.s32.totalorder %v3754_v55, %v1043_v63 }
 0x18d   :  { %vm2651_vm9 = vmpackc.low %vm1083_vm8, %vm1082_vm7 }
 0x18e   :  { %3015 = vmatmul.mubr.msk.bf16.gmra.mrb[24].mxu0 %vm2651_vm9, %v3393_v58  ;;  %vm1541_vm9 = vcmp.eq.s32.totalorder %v3754_v55, %v1485_v13 }
 0x18f   :  { %v1503_v25 = vpop.permute.xlu0 %1502 }
 0x190   :  { %v1467_v0 = vpop.permute.xlu1 %1466 }
 0x191   :  { %vm1535_vm11 = vcmp.eq.s32.totalorder %v3754_v55, %v1467_v0  ;;  %v3292_v0 = vld [vmem:[#allocation2] sm:$0xff]  }
 0x192   :  { %vm2725_vm12 = vmpackc.low %vm1535_vm11, %vm1534_vm10 }
 0x193   :  { %3050 = vmatprep.mubr.msk.bf16.mxu1 %vm2725_vm12, %v3393_v58  ;;  %vm1523_vm12 = vcmp.eq.s32.totalorder %v3754_v55, %v1431_v42  ;;  %v1509_v50 = vpop.permute.xlu0 %1508 }
 0x194   :  { %v1470_v1 = vpop.permute.xlu1 %1469 }
 0x195   :  { %vm1536_vm14 = vcmp.eq.s32.totalorder %v3754_v55, %v1470_v1 }
 0x196   :  { %vm2727_vm15 = vmpackc.low %vm1537_vm13, %vm1536_vm14 }
 0x197   :  { %3051 = vmatmul.mubr.msk.bf16.vlgmr.msra.gmra.mrb[32].mxu1 %vm2727_vm15, %v3393_v58  ;;  %vm1525_vm15 = vcmp.eq.s32.totalorder %v3754_v55, %v1437_v6  ;;  %v1455_v38 = vpop.permute.xlu0 %1454 }
 0x199   :  { %v1046_v2 = vpop.permute.xlu1 %1045 }
 0x19a   :  { %vm1084_vm1 = vcmp.eq.s32.totalorder %v3754_v55, %v1046_v2  ;;  %v3395_v2 = vmov 0.0  }
 0x19b   :  { %vm2653_vm2 = vmpackc.low %vm1085_vm0, %vm1084_vm1  ;;  %v1461_v41 = vpop.permute.xlu0 %1460  ;;  %3070 = vmatprep.subr.bf16.mxu1 %v3395_v2 }
 0x19c   :  { %3018 = vmatprep.mubr.msk.bf16.mxu0 %vm2653_vm2, %v3393_v58  ;;  %vm1543_vm2 = vcmp.eq.s32.totalorder %v3754_v55, %v1491_v9  ;;  %3071 = vmatpush3.bf16.msra.mxu1 %v3292_v0 }
 0x19d   :  { %v1052_v8 = vpop.permute.xlu1 %1051  ;;  %3072 = vmatprep.subr.bf16.mxu1 %v3395_v2 }
 0x19e   :  { %vm1086_vm3 = vcmp.eq.s32.totalorder %v3754_v55, %v1052_v8 }
 0x19f   :  { %v1515_v31 = vpop.permute.xlu0 %1514 }
 0x1a1   :  { %v1055_v10 = vpop.permute.xlu1 %1054 }
 0x1a2   :  { %vm1087_vm4 = vcmp.eq.s32.totalorder %v3754_v55, %v1055_v10 }
 0x1a3   :  { %vm2655_vm5 = vmpackc.low %vm1087_vm4, %vm1086_vm3  ;;  %v1521_v53 = vpop.permute.xlu0 %1520 }
 0x1a4   :  { %3019 = vmatmul.mubr.msk.bf16.gmra.mrb[28].mxu0 %vm2655_vm5, %v3393_v58  ;;  %vm1545_vm5 = vcmp.eq.s32.totalorder %v3754_v55, %v1497_v39  ;;  %v3293_v39 = vld [vmem:[#allocation2 + $0x8] sm:$0xff]  }
 0x1a5   :  { %3073 = vmatpush3.bf16.msra.mxu1 %v3293_v39 }
 0x1a6   :  { %v1479_v12 = vpop.permute.xlu1 %1478  ;;  %3074 = vmatprep.subr.bf16.mxu1 %v3395_v2 }
 0x1a7   :  { %vm1539_vm7 = vcmp.eq.s32.totalorder %v3754_v55, %v1479_v12 }
 0x1a8   :  { %vm2729_vm8 = vmpackc.low %vm1539_vm7, %vm1538_vm6 }
 0x1a9   :  { %3054 = vmatprep.mubr.msk.bf16.mxu1 %vm2729_vm8, %v3393_v58  ;;  %vm1527_vm8 = vcmp.eq.s32.totalorder %v3754_v55, %v1443_v15  ;;  %v3294_v15 = vld [vmem:[#allocation2 + $0x10] sm:$0xff]  }
 0x1aa   :  { %v1482_v14 = vpop.permute.xlu1 %1481  ;;  %3075 = vmatpush3.bf16.msra.mxu1 %v3294_v15 }
 0x1ab   :  { %vm1540_vm10 = vcmp.eq.s32.totalorder %v3754_v55, %v1482_v14  ;;  %3076 = vmatprep.subr.bf16.mxu1 %v3395_v2 }
 0x1ac   :  { %vm2731_vm11 = vmpackc.low %vm1541_vm9, %vm1540_vm10 }
 0x1ad   :  { %3055 = vmatmul.mubr.msk.bf16.gmra.mrb[36].mxu1 %vm2731_vm11, %v3393_v58  ;;  %vm1529_vm11 = vcmp.eq.s32.totalorder %v3754_v55, %v1449_v17 }
 0x1ae   :  { %v1428_v16 = vpop.permute.xlu1 %1427 }
 0x1af   :  { %vm1522_vm13 = vcmp.eq.s32.totalorder %v3754_v55, %v1428_v16 }
 0x1b0   :  { %vm2713_vm14 = vmpackc.low %vm1523_vm12, %vm1522_vm13 }
 0x1b1   :  { %3038 = vmatprep.mubr.msk.bf16.mxu0 %vm2713_vm14, %v3393_v58  ;;  %vm1547_vm14 = vcmp.eq.s32.totalorder %v3754_v55, %v1503_v25  ;;  %v3296_v25 = vld [vmem:[#allocation2 + $0x20] sm:$0xff]  }
 0x1b2   :  { %v1434_v19 = vpop.permute.xlu1 %1433 }
 0x1b3   :  { %vm1524_vm0 = vcmp.eq.s32.totalorder %v3754_v55, %v1434_v19 }
 0x1b4   :  { %vm2715_vm1 = vmpackc.low %vm1525_vm15, %vm1524_vm0 }
 0x1b5   :  { %3039 = vmatmul.mubr.msk.bf16.vlgmr.msra.gmra.mrb[0].mxu0 %vm2715_vm1, %v3393_v58  ;;  %vm1549_vm1 = vcmp.eq.s32.totalorder %v3754_v55, %v1509_v50 }
 0x1b6   :  { %v1488_v22 = vpop.permute.xlu1 %1487 }
 0x1b7   :  { %vm1542_vm3 = vcmp.eq.s32.totalorder %v3754_v55, %v1488_v22  ;;  %v3295_v22 = vld [vmem:[#allocation2 + $0x18] sm:$0xff]  }
 0x1b8   :  { %vm2733_vm4 = vmpackc.low %vm1543_vm2, %vm1542_vm3  ;;  %3077 = vmatpush3.bf16.msra.mxu1 %v3295_v22 }
 0x1b9   :  { %3058 = vmatprep.mubr.msk.bf16.mxu1 %vm2733_vm4, %v3393_v58  ;;  %vm1531_vm4 = vcmp.eq.s32.totalorder %v3754_v55, %v1455_v38  ;;  %3078 = vmatprep.subr.bf16.mxu1 %v3395_v2 }
 0x1ba   :  { %v1494_v28 = vpop.permute.xlu1 %1493 }
 0x1bb   :  { %vm1544_vm6 = vcmp.eq.s32.totalorder %v3754_v55, %v1494_v28  ;;  %v3297_v28 = vld [vmem:[#allocation2 + $0x28] sm:$0xff]  }
 0x1bc   :  { %vm2735_vm7 = vmpackc.low %vm1545_vm5, %vm1544_vm6  ;;  %3079 = vmatpush3.bf16.msra.mxu1 %v3296_v25 }
 0x1bd   :  { %3059 = vmatmul.mubr.msk.bf16.gmra.mrb[40].mxu1 %vm2735_vm7, %v3393_v58  ;;  %vm1533_vm7 = vcmp.eq.s32.totalorder %v3754_v55, %v1461_v41  ;;  %3080 = vmatprep.subr.bf16.mxu1 %v3395_v2 }
 0x1be   :  { %v1440_v32 = vpop.permute.xlu1 %1439  ;;  %v4140_v21 = vpop.f32.mrb[0].mxu1 }
 0x1bf   :  { %vm1526_vm9 = vcmp.eq.s32.totalorder %v3754_v55, %v1440_v32  ;;  %v4144_v49 = vpop.f32.mrb[1].mxu1 }
 0x1c0   :  { %vm2717_vm10 = vmpackc.low %vm1527_vm8, %vm1526_vm9  ;;  %v4146_v35 = vpop.f32.mrb[2].mxu1  ;;  %3081 = vmatpush3.bf16.msra.mxu1 %v3297_v28 }
 0x1c1   :  { %v4148_v29 = vpop.f32.mrb[3].mxu1  ;;  %3042 = vmatprep.mubr.msk.bf16.mxu0 %vm2717_vm10, %v3393_v58  ;;  %vm1551_vm10 = vcmp.eq.s32.totalorder %v3754_v55, %v1515_v31  ;;  %3082 = vmatprep.subr.bf16.mxu1 %v3395_v2 }
 0x1c2   :  { %v1446_v23 = vpop.permute.xlu1 %1445 }
 0x1c3   :  { %vm1528_vm12 = vcmp.eq.s32.totalorder %v3754_v55, %v1446_v23 }
 0x1c4   :  { %vm2719_vm13 = vmpackc.low %vm1529_vm11, %vm1528_vm12 }
 0x1c5   :  { %3043 = vmatmul.mubr.msk.bf16.gmra.mrb[4].mxu0 %vm2719_vm13, %v3393_v58  ;;  %vm1553_vm13 = vcmp.eq.s32.totalorder %v3754_v55, %v1521_v53 }
 0x1c6   :  { %v1500_v27 = vpop.permute.xlu1 %1499 }
 0x1c7   :  { %vm1546_vm15 = vcmp.eq.s32.totalorder %v3754_v55, %v1500_v27 }
 0x1c8   :  { %vm2737_vm0 = vmpackc.low %vm1547_vm14, %vm1546_vm15 }
 0x1c9   :  { %3062 = vmatprep.mubr.msk.bf16.mxu1 %vm2737_vm0, %v3393_v58  ;;  %vm3396_vm0 = vmmov 0  }
 0x1ca   :  { %v1506_v18 = vpop.permute.xlu1 %1505 }
 0x1cb   :  { %vm1548_vm2 = vcmp.eq.s32.totalorder %v3754_v55, %v1506_v18 }
 0x1cc   :  { %vm2739_vm3 = vmpackc.low %vm1549_vm1, %vm1548_vm2  ;;  %vm2149_vm1 = vcmask 1041409   ;;  %vm2152_vm2 = vcmask 1042434  }
 0x1cd   :  { %3063 = vmatmul.mubr.msk.bf16.gmra.mrb[44].mxu1 %vm2739_vm3, %v3393_v58  ;;  %vm2155_vm3 = vcmask 1043459  }
 0x1ce   :  { %v1452_v20 = vpop.permute.xlu1 %1451 }
 0x1cf   :  { %vm1530_vm5 = vcmp.eq.s32.totalorder %v3754_v55, %v1452_v20  ;;  %v3298_v20 = vld [vmem:[#allocation2 + $0x30] sm:$0xff]  }
 0x1d0   :  { %vm2721_vm6 = vmpackc.low %vm1531_vm4, %vm1530_vm5  ;;  %v4162_v43 = vpop.f32.mrb[4].mxu1  ;;  %3083 = vmatpush3.bf16.msra.mxu1 %v3298_v20  ;;  %vm2158_vm4 = vcmask 1044484   ;;  %vm2161_vm5 = vcmask 1045509  }
 0x1d1   :  { %v4164_v45 = vpop.f32.mrb[5].mxu1  ;;  %3046 = vmatprep.mubr.msk.bf16.mxu0 %vm2721_vm6, %v3393_v58  ;;  %3084 = vmatprep.subr.bf16.mxu1 %v3395_v2  ;;  %vm2164_vm6 = vcmask 1046534  }
 0x1d2   :  { %v1458_v34 = vpop.permute.xlu1 %1457  ;;  %v4167_v46 = vpop.f32.mrb[6].mxu1 }
 0x1d3   :  { %vm1532_vm8 = vcmp.eq.s32.totalorder %v3754_v55, %v1458_v34  ;;  %v4171_v51 = vpop.f32.mrb[7].mxu1  ;;  %v3299_v34 = vld [vmem:[#allocation2 + $0x38] sm:$0xff]  }
 0x1d4   :  { %vm2723_vm9 = vmpackc.low %vm1533_vm7, %vm1532_vm8  ;;  %3085 = vmatpush3.bf16.msra.mxu1 %v3299_v34  ;;  %vm2167_vm7 = vcmask 1047559  }
 0x1d5   :  { %3047 = vmatmul.mubr.msk.bf16.gmra.mrb[8].mxu0 %vm2723_vm9, %v3393_v58  ;;  %3090 = vmatprep.subr.bf16.mxu1 %v3395_v2 }
 0x1d6   :  { %v1512_v52 = vpop.permute.xlu1 %1511 }
 0x1d7   :  { %vm1550_vm11 = vcmp.eq.s32.totalorder %v3754_v55, %v1512_v52 }
 0x1d8   :  { %vm2741_vm12 = vmpackc.low %vm1551_vm10, %vm1550_vm11 }
 0x1d9   :  { %3066 = vmatprep.mubr.msk.bf16.mxu1 %vm2741_vm12, %v3393_v58 }
 0x1da   :  { %v1518_v37 = vpop.permute.xlu1 %1517 }
 0x1db   :  { %vm1552_vm14 = vcmp.eq.s32.totalorder %v3754_v55, %v1518_v37 }
 0x1dc   :  { %vm2743_vm15 = vmpackc.low %vm1553_vm13, %vm1552_vm14 }
 0x1dd   :  { %3067 = vmatmul.mubr.msk.bf16.gmra.mrb[48].mxu1 %vm2743_vm15, %v3393_v58 }
 0x1de   :  { %3086 = vmatprep.mubr.msk.bf16.mxu1 %vm3396_vm0, %v3395_v2 }
 0x1e6   :  { %v4180_v24 = vpop.f32.mrb[8].mxu1 }
 0x1e7   :  { %v4182_v40 = vpop.f32.mrb[9].mxu1 }
 0x1e8   :  { %v4184_v4 = vpop.f32.mrb[10].mxu1 }
 0x1e9   :  { %v4186_v54 = vpop.f32.mrb[11].mxu1 }
 0x1fc   :  { %v2908_v3 = vpop.f32.mrb[12].mxu1 }
 0x1fd   :  { %v672_v26 = vpop.f32.mrb[13].mxu1 }
 0x1fe   :  { %v2909_v30 = vpop.f32.mrb[14].mxu1 }
 0x1ff   :  { %v675_v47 = vpop.f32.mrb[15].mxu1 }
 0x212   :  { %v2912_v48 = vpop.f32.mrb[16].mxu1 }
 0x213   :  { %v688_v56 = vpop.f32.mrb[17].mxu1 }
 0x214   :  { %v2913_v57 = vpop.f32.mrb[18].mxu1 }
 0x215   :  { %v691_v59 = vpop.f32.mrb[19].mxu1 }
 0x21f   :  { %v3004_v55 = vpop.f32.mrb[12].mxu0 }
 0x220   :  { %v4188_v5 = vadd.f32 %v3004_v55, %v2908_v3  ;;  %v1315_v58 = vpop.f32.mrb[13].mxu0 }
 0x221   :  { %v4190_v7 = vadd.f32 %v1315_v58, %v672_v26  ;;  %v3005_v36 = vpop.f32.mrb[14].mxu0 }
 0x222   :  { %v4192_v60 = vadd.f32 %v3005_v36, %v2909_v30  ;;  %v1318_v33 = vpop.f32.mrb[15].mxu0 }
 0x223   :  { %v4194_v61 = vadd.f32 %v1318_v33, %v675_v47 }
 0x228   :  { %v2916_v62 = vpop.f32.mrb[20].mxu1 }
 0x229   :  { %v704_v11 = vpop.f32.mrb[21].mxu1 }
 0x22a   :  { %v2917_v44 = vpop.f32.mrb[22].mxu1 }
 0x22b   :  { %v707_v63 = vpop.f32.mrb[23].mxu1 }
 0x235   :  { %v3008_v13 = vpop.f32.mrb[16].mxu0 }
 0x236   :  { %v4196_v1 = vadd.f32 %v3008_v13, %v2912_v48  ;;  %v1331_v42 = vpop.f32.mrb[17].mxu0 }
 0x237   :  { %v4199_v6 = vadd.f32 %v1331_v42, %v688_v56  ;;  %v3009_v8 = vpop.f32.mrb[18].mxu0 }
 0x238   :  { %v4201_v9 = vadd.f32 %v3009_v8, %v2913_v57  ;;  %v1334_v10 = vpop.f32.mrb[19].mxu0 }
 0x239   :  { %v4204_v12 = vadd.f32 %v1334_v10, %v691_v59 }
 0x23e   :  { %v2920_v14 = vpop.f32.mrb[24].mxu1 }
 0x23f   :  { %v720_v16 = vpop.f32.mrb[25].mxu1 }
 0x240   :  { %v2921_v19 = vpop.f32.mrb[26].mxu1 }
 0x241   :  { %v723_v17 = vpop.f32.mrb[27].mxu1 }
 0x24b   :  { %v3012_v32 = vpop.f32.mrb[20].mxu0 }
 0x24c   :  { %v4210_v50 = vadd.f32 %v3012_v32, %v2916_v62  ;;  %v1347_v23 = vpop.f32.mrb[21].mxu0  ;;  %v4235_v62 = vld [vmem:[%s4391_s3] sm:$0xff] }
 0x24d   :  { %v4212_v38 = vadd.f32 %v1347_v23, %v704_v11  ;;  %v3013_v27 = vpop.f32.mrb[22].mxu0 }
 0x24e   :  { %v4215_v18 = vadd.f32 %v3013_v27, %v2917_v44  ;;  %v1350_v41 = vpop.f32.mrb[23].mxu0 }
 0x24f   :  { %v4217_v31 = vadd.f32 %v1350_v41, %v707_v63  ;;  %v4241_v63 = vld [vmem:[%s4391_s3 + $0x8] sm:$0xff] }
 0x254   :  { %v2924_v52 = vpop.f32.mrb[28].mxu1 }
 0x255   :  { %v736_v53 = vpop.f32.mrb[29].mxu1 }
 0x256   :  { %v2925_v37 = vpop.f32.mrb[30].mxu1 }
 0x257   :  { %v739_v3 = vpop.f32.mrb[31].mxu1 }
 0x261   :  { %v3016_v26 = vpop.f32.mrb[24].mxu0 }
 0x262   :  { %v4223_v30 = vadd.f32 %v3016_v26, %v2920_v14  ;;  %v1363_v47 = vpop.f32.mrb[25].mxu0 }
 0x263   :  { %v4225_v48 = vadd.f32 %v1363_v47, %v720_v16  ;;  %v3017_v56 = vpop.f32.mrb[26].mxu0 }
 0x264   :  { %v4227_v57 = vadd.f32 %v3017_v56, %v2921_v19  ;;  %v1366_v59 = vpop.f32.mrb[27].mxu0 }
 0x265   :  { %v4229_v55 = vadd.f32 %v1366_v59, %v723_v17 }
 0x26a   :  { %v3052_v58 = vpop.f32.mrb[32].mxu1 }
 0x26b   :  { %v3139_v36 = vadd.f32 %v4188_v5, %v3052_v58  ;;  %v1781_v33 = vpop.f32.mrb[33].mxu1 }
 0x26c   :  { %v3141_v11 = vadd.f32 %v4190_v7, %v1781_v33  ;;  %v3053_v44 = vpop.f32.mrb[34].mxu1 }
 0x26d   :  { %v3143_v13 = vadd.f32 %v4192_v60, %v3053_v44  ;;  %v1784_v0 = vpop.f32.mrb[35].mxu1  ;;  %v1908_v5 = vadd.f32 %v3139_v36, %v4235_v62 }
 0x26e   :  { %v3145_v42 = vadd.f32 %v4194_v61, %v1784_v0  ;;  %v1906_v10 = vadd.f32 %v3141_v11, %v4235_v62 }
 0x26f   :  { %v1909_v8 = vadd.f32 %v3143_v13, %v4241_v63 }
 0x270   :  { %v1907_v39 = vadd.f32 %v3145_v42, %v4241_v63 }
 0x271   :  { %v1975_v7 = vmax.f32 %v1908_v5, %v1909_v8 }
 0x272   :  { %v1968_v14 = vmax.f32 %v1906_v10, %v1907_v39 }
 0x274   :  { %v1969_v0 = vrot.slane %v1968_v14, 4 }
 0x277   :  { %v3020_v15 = vpop.f32.mrb[28].mxu0 }
 0x278   :  { %v4249_v16 = vadd.f32 %v3020_v15, %v2924_v52  ;;  %v1379_v19 = vpop.f32.mrb[29].mxu0 }
 0x279   :  { %v4251_v17 = vadd.f32 %v1379_v19, %v736_v53  ;;  %v3021_v60 = vpop.f32.mrb[30].mxu0 }
 0x27a   :  { %v4253_v22 = vadd.f32 %v3021_v60, %v2925_v37  ;;  %v1382_v61 = vpop.f32.mrb[31].mxu0 }
 0x27b   :  { %v4255_v25 = vadd.f32 %v1382_v61, %v739_v3 }
 0x280   :  { %v3056_v28 = vpop.f32.mrb[36].mxu1 }
 0x281   :  { %v3147_v32 = vadd.f32 %v4196_v1, %v3056_v28  ;;  %v1797_v23 = vpop.f32.mrb[37].mxu1  ;;  %v1970_v28 = vmax.f32 %v1968_v14, %v1969_v0  ;;  %v4279_v14 = vld [vmem:[%s4390_s2] ss:$0 sm:$0xff] }
 0x282   :  { %v3149_v27 = vadd.f32 %v4199_v6, %v1797_v23  ;;  %v3057_v41 = vpop.f32.mrb[38].mxu1 }
 0x283   :  { %v3151_v20 = vadd.f32 %v4201_v9, %v3057_v41  ;;  %v1800_v34 = vpop.f32.mrb[39].mxu1  ;;  %v1912_v53 = vadd.f32 %v3147_v32, %v4235_v62 }
 0x284   :  { %v3153_v52 = vadd.f32 %v4204_v12, %v1800_v34  ;;  %v1910_v26 = vadd.f32 %v3149_v27, %v4235_v62  ;;  %v1976_v12 = vrot.slane %v1975_v7, 4 }
 0x285   :  { %v1913_v37 = vadd.f32 %v3151_v20, %v4241_v63 }
 0x286   :  { %v1911_v3 = vadd.f32 %v3153_v52, %v4241_v63  ;;  %v1977_v19 = vmax.f32 %v1975_v7, %v1976_v12 }
 0x287   :  { %v1989_v47 = vmax.f32 %v1912_v53, %v1913_v37 }
 0x288   :  { %v1982_v56 = vmax.f32 %v1910_v26, %v1911_v3  ;;  %v3040_v1 = vpop.f32.mrb[0].mxu0  ;;  %v1978_v26 = vrot.slane %v1977_v19, 2 }
 0x289   :  { %v1990_v59 = vrot.slane %v1989_v47, 4  ;;  %v3126_v6 = vadd.f32 %v3040_v1, %v4140_v21  ;;  %v1733_v58 = vpop.f32.mrb[1].mxu0  ;;  %v1971_v1 = vrot.slane %v1970_v28, 2 }
 0x28a   :  { %v1983_v36 = vrot.slane %v1982_v56, 4  ;;  %v3127_v9 = vadd.f32 %v1733_v58, %v4144_v49  ;;  %v3041_v33 = vpop.f32.mrb[2].mxu0 }
 0x28b   :  { %v1991_v11 = vmax.f32 %v1989_v47, %v1990_v59  ;;  %v3128_v44 = vadd.f32 %v3041_v33, %v4146_v35  ;;  %v1736_v13 = vpop.f32.mrb[3].mxu0  ;;  %v1896_v10 = vadd.f32 %v3126_v6, %v4235_v62 }
 0x28c   :  { %v1984_v42 = vmax.f32 %v1982_v56, %v1983_v36  ;;  %v3129_v5 = vadd.f32 %v1736_v13, %v4148_v29  ;;  %v1894_v15 = vadd.f32 %v3127_v9, %v4235_v62 }
 0x28d   :  { %v1992_v8 = vrot.slane %v1991_v11, 2  ;;  %v1897_v39 = vadd.f32 %v3128_v44, %v4241_v63  ;;  %v1979_v44 = vmax.f32 %v1977_v19, %v1978_v26 }
 0x28e   :  { %v1985_v21 = vrot.slane %v1984_v42, 2  ;;  %v1895_v49 = vadd.f32 %v3129_v5, %v4241_v63  ;;  %v1972_v5 = vmax.f32 %v1970_v28, %v1971_v1 }
 0x28f   :  { %v1993_v60 = vmax.f32 %v1991_v11, %v1992_v8  ;;  %v1933_v61 = vmax.f32 %v1896_v10, %v1897_v39 }
 0x290   :  { %v1986_v35 = vmax.f32 %v1984_v42, %v1985_v21  ;;  %v1926_v32 = vmax.f32 %v1894_v15, %v1895_v49  ;;  %v3060_v23 = vpop.f32.mrb[40].mxu1 }
 0x291   :  { %v1994_v27 = vrot.slane %v1993_v60, 1  ;;  %v1934_v41 = vrot.slane %v1933_v61, 4  ;;  %v3155_v29 = vadd.f32 %v4210_v50, %v3060_v23  ;;  %v1813_v20 = vpop.f32.mrb[41].mxu1 }
 0x292   :  { %v1987_v34 = vrot.slane %v1986_v35, 1  ;;  %v1927_v52 = vrot.slane %v1926_v32, 4  ;;  %v3157_v53 = vadd.f32 %v4212_v38, %v1813_v20  ;;  %v3061_v37 = vpop.f32.mrb[42].mxu1 }
 0x293   :  { %v1995_v3 = vmax.f32 %v1993_v60, %v1994_v27  ;;  %v1935_v47 = vmax.f32 %v1933_v61, %v1934_v41  ;;  %v3159_v7 = vadd.f32 %v4215_v18, %v3061_v37  ;;  %v1816_v56 = vpop.f32.mrb[43].mxu1  ;;  %v1916_v36 = vadd.f32 %v3155_v29, %v4235_v62 }
 0x294   :  { %v1988_v59 = vmax.f32 %v1986_v35, %v1987_v34  ;;  %v1928_v50 = vmax.f32 %v1926_v32, %v1927_v52  ;;  %v3161_v6 = vadd.f32 %v4217_v31, %v1816_v56  ;;  %v1914_v12 = vadd.f32 %v3157_v53, %v4235_v62 }
 0x295   :  { %v2054_v38 = vadd.f32 %v4279_v14, %v1995_v3  ;;  %v1936_v58 = vrot.slane %v1935_v47, 2  ;;  %v1917_v9 = vadd.f32 %v3159_v7, %v4241_v63  ;;  %v1980_v41 = vrot.slane %v1979_v44, 1 }
 0x296   :  { %v2053_v18 = vadd.f32 %v4279_v14, %v1988_v59  ;;  %v1929_v33 = vrot.slane %v1928_v50, 2  ;;  %v1915_v11 = vadd.f32 %v3161_v6, %v4241_v63  ;;  %v1973_v52 = vrot.slane %v1972_v5, 1 }
 0x297   :  { %v2070_v13 = vmax.f32 %v2054_v38, 0.0  ;;  %v1937_v0 = vmax.f32 %v1935_v47, %v1936_v58  ;;  %v2003_v42 = vmax.f32 %v1916_v36, %v1917_v9 }
 0x298   :  { %v2069_v31 = vmax.f32 %v2053_v18, 0.0  ;;  %v1930_v8 = vmax.f32 %v1928_v50, %v1929_v33  ;;  %v1996_v10 = vmax.f32 %v1914_v12, %v1915_v11  ;;  %v3044_v39 = vpop.f32.mrb[4].mxu0 }
 0x299   :  { %v2086_v21 = vpack.c.bf16 %v2070_v13, %v2070_v13  ;;  %v1938_v15 = vrot.slane %v1937_v0, 1  ;;  %v2004_v49 = vrot.slane %v2003_v42, 4  ;;  %v3130_v60 = vadd.f32 %v3044_v39, %v4162_v43  ;;  %v1749_v61 = vpop.f32.mrb[5].mxu0 }
 0x29a   :  { %v2085_v35 = vpack.c.bf16 %v2069_v31, %v2069_v31  ;;  %v1931_v32 = vrot.slane %v1930_v8, 1  ;;  %v1997_v23 = vrot.slane %v1996_v10, 4  ;;  %v3131_v27 = vadd.f32 %v1749_v61, %v4164_v45  ;;  %v3045_v19 = vpop.f32.mrb[6].mxu0 }
 0x29b   :  { %v2141_v29 = vunpack.c.l.b16 %v2086_v21  ;;  %v1939_v20 = vmax.f32 %v1937_v0, %v1938_v15  ;;  %v2005_v28 = vmax.f32 %v2003_v42, %v2004_v49  ;;  %v1752_v34 = vpop.f32.mrb[7].mxu0  ;;  %v3132_v7 = vadd.f32 %v3045_v19, %v4167_v46 }
 0x29c   :  { %v2140_v53 = vunpack.c.l.b16 %v2085_v35  ;;  %v1932_v37 = vmax.f32 %v1930_v8, %v1931_v32  ;;  %v1998_v26 = vmax.f32 %v1996_v10, %v1997_v23  ;;  %v1900_v45 = vadd.f32 %v3130_v60, %v4235_v62 }
 0x29d   :  { %v2169_v3 = vrot.slane %v2141_v29, 7  ;;  %v2046_v47 = vadd.f32 %v4279_v14, %v1939_v20  ;;  %v2006_v43 = vrot.slane %v2005_v28, 2  ;;  %v3133_v59 = vadd.f32 %v1752_v34, %v4171_v51 }
 0x29e   :  { %v2045_v56 = vadd.f32 %v4279_v14, %v1932_v37  ;;  %v1999_v1 = vrot.slane %v1998_v26, 2  ;;  %v1901_v58 = vadd.f32 %v3132_v7, %v4241_v63  ;;  %v1898_v18 = vadd.f32 %v3131_v27, %v4235_v62 }
 0x29f   :  { %v4296_v50 = vsel %vm2149_vm1, %v2169_v3, %v2140_v53  ;;  %v2062_v6 = vmax.f32 %v2046_v47, 0.0  ;;  %v2007_v38 = vmax.f32 %v2005_v28, %v2006_v43  ;;  %v1899_v46 = vadd.f32 %v3133_v59, %v4241_v63 }
 0x2a0   :  { %v2061_v36 = vmax.f32 %v2045_v56, 0.0  ;;  %v2000_v9 = vmax.f32 %v1998_v26, %v1999_v1  ;;  %v3064_v33 = vpop.f32.mrb[44].mxu1  ;;  %v1947_v13 = vmax.f32 %v1900_v45, %v1901_v58  ;;  %v1981_v21 = vmax.f32 %v1979_v44, %v1980_v41 }
 0x2a1   :  { %v2078_v12 = vpack.c.bf16 %v2062_v6, %v2062_v6  ;;  %v2008_v11 = vrot.slane %v2007_v38, 1  ;;  %v3163_v0 = vadd.f32 %v4223_v30, %v3064_v33  ;;  %v1829_v51 = vpop.f32.mrb[45].mxu1  ;;  %v1940_v8 = vmax.f32 %v1898_v18, %v1899_v46 }
 0x2a2   :  { %v2077_v42 = vpack.c.bf16 %v2061_v36, %v2061_v36  ;;  %v2001_v31 = vrot.slane %v2000_v9, 1  ;;  %v3165_v10 = vadd.f32 %v4225_v48, %v1829_v51  ;;  %v3065_v39 = vpop.f32.mrb[46].mxu1  ;;  %v1948_v60 = vrot.slane %v1947_v13, 4 }
 0x2a3   :  { %v2133_v15 = vunpack.c.l.b16 %v2078_v12  ;;  %v2009_v49 = vmax.f32 %v2007_v38, %v2008_v11  ;;  %v1832_v61 = vpop.f32.mrb[47].mxu1  ;;  %v4303_v35 = vmax.f32 %v1972_v5, %v1973_v52  ;;  %v1941_v27 = vrot.slane %v1940_v8, 4 }
 0x2a4   :  { %v2132_v32 = vunpack.c.l.b16 %v2077_v42  ;;  %v2002_v23 = vmax.f32 %v2000_v9, %v2001_v31  ;;  %v1949_v29 = vmax.f32 %v1947_v13, %v1948_v60  ;;  %v3167_v20 = vadd.f32 %v4227_v57, %v3065_v39 }
 0x2a5   :  { %v2148_v19 = vrot.slane %v2133_v15, 7  ;;  %v2056_v30 = vadd.f32 %v4279_v14, %v2009_v49  ;;  %v1942_v28 = vmax.f32 %v1940_v8, %v1941_v27  ;;  %v1920_v44 = vadd.f32 %v3163_v0, %v4235_v62 }
 0x2a6   :  { %v2055_v48 = vadd.f32 %v4279_v14, %v2002_v23  ;;  %v3169_v41 = vadd.f32 %v4229_v55, %v1832_v61  ;;  %v1950_v52 = vrot.slane %v1949_v29, 2  ;;  %v1921_v53 = vadd.f32 %v3167_v20, %v4241_v63 }
 0x2a7   :  { %v4311_v5 = vsel %vm2149_vm1, %v2148_v19, %v2132_v32  ;;  %v2072_v34 = vmax.f32 %v2056_v30, 0.0  ;;  %v1943_v26 = vrot.slane %v1942_v28, 2  ;;  %v1918_v3 = vadd.f32 %v3165_v10, %v4235_v62 }
 0x2a8   :  { %v2071_v37 = vmax.f32 %v2055_v48, 0.0  ;;  %v1919_v57 = vadd.f32 %v3169_v41, %v4241_v63  ;;  %v3048_v47 = vpop.f32.mrb[8].mxu0  ;;  %v1951_v7 = vmax.f32 %v1949_v29, %v1950_v52  ;;  %v2017_v56 = vmax.f32 %v1920_v44, %v1921_v53 }
 0x2a9   :  { %v2088_v43 = vpack.c.bf16 %v2072_v34, %v2072_v34  ;;  %v3134_v55 = vadd.f32 %v3048_v47, %v4180_v24  ;;  %v1765_v1 = vpop.f32.mrb[9].mxu0  ;;  %v1944_v59 = vmax.f32 %v1942_v28, %v1943_v26  ;;  %v4319_v36 = vadd.f32 %v4279_v14, %v1981_v21 }
 0x2aa   :  { %v2087_v45 = vpack.c.bf16 %v2071_v37, %v2071_v37  ;;  %v2010_v6 = vmax.f32 %v1918_v3, %v1919_v57  ;;  %v3135_v38 = vadd.f32 %v1765_v1, %v4182_v40  ;;  %v3049_v58 = vpop.f32.mrb[10].mxu0  ;;  %v1952_v18 = vrot.slane %v1951_v7, 1 }
 0x2ab   :  { %v2143_v9 = vunpack.c.l.b16 %v2088_v43  ;;  %v2018_v46 = vrot.slane %v2017_v56, 4  ;;  %v1768_v33 = vpop.f32.mrb[11].mxu0  ;;  %v1945_v11 = vrot.slane %v1944_v59, 1  ;;  %v1904_v0 = vadd.f32 %v3134_v55, %v4235_v62 }
 0x2ac   :  { %v2142_v12 = vunpack.c.l.b16 %v2087_v45  ;;  %v2011_v13 = vrot.slane %v2010_v6, 4  ;;  %v1953_v24 = vmax.f32 %v1951_v7, %v1952_v18  ;;  %v1902_v42 = vadd.f32 %v3135_v38, %v4235_v62 }
 0x2ad   :  { %v2019_v51 = vmax.f32 %v2017_v56, %v2018_v46  ;;  %v3136_v31 = vadd.f32 %v3049_v58, %v4184_v4  ;;  %v1946_v8 = vmax.f32 %v1944_v59, %v1945_v11  ;;  %v3137_v39 = vadd.f32 %v1768_v33, %v4186_v54 }
 0x2ae   :  { %v2171_v40 = vrot.slane %v2142_v12, 6  ;;  %v2012_v10 = vmax.f32 %v2010_v6, %v2011_v13  ;;  %v2173_v21 = vrot.slane %v2143_v9, 5  ;;  %v2048_v15 = vadd.f32 %v4279_v14, %v1953_v24 }
 0x2af   :  { %v2020_v49 = vrot.slane %v2019_v51, 2  ;;  %v1905_v60 = vadd.f32 %v3136_v31, %v4241_v63  ;;  %v2047_v32 = vadd.f32 %v4279_v14, %v1946_v8  ;;  %v1903_v27 = vadd.f32 %v3137_v39, %v4241_v63 }
 0x2b0   :  { %v2172_v61 = vsel %vm2152_vm2, %v2171_v40, %v4296_v50  ;;  %v2013_v23 = vrot.slane %v2012_v10, 2  ;;  %v3068_v4 = vpop.f32.mrb[48].mxu1  ;;  %v2064_v19 = vmax.f32 %v2048_v15, 0.0  ;;  %v2051_v3 = vadd.f32 %v4279_v14, %v4303_v35 }
 0x2b1   :  { %v2021_v30 = vmax.f32 %v2019_v51, %v2020_v49  ;;  %v4332_v29 = vsel %vm2155_vm3, %v2173_v21, %v2172_v61  ;;  %v1961_v54 = vmax.f32 %v1904_v0, %v1905_v60  ;;  %v1845_v20 = vpop.f32.mrb[49].mxu1  ;;  %v2063_v48 = vmax.f32 %v2047_v32, 0.0 }
 0x2b2   :  { %v2014_v28 = vmax.f32 %v2012_v10, %v2013_v23  ;;  %v1954_v44 = vmax.f32 %v1902_v42, %v1903_v27  ;;  %v3171_v41 = vadd.f32 %v4249_v16, %v3068_v4  ;;  %v3069_v34 = vpop.f32.mrb[50].mxu1  ;;  %v2080_v50 = vpack.c.bf16 %v2064_v19, %v2064_v19 }
 0x2b3   :  { %v2022_v52 = vrot.slane %v2021_v30, 1  ;;  %v1962_v53 = vrot.slane %v1961_v54, 4  ;;  %v3173_v37 = vadd.f32 %v4251_v17, %v1845_v20  ;;  %v1848_v26 = vpop.f32.mrb[51].mxu1  ;;  %v2079_v57 = vpack.c.bf16 %v2063_v48, %v2063_v48 }
 0x2b4   :  { %v2015_v47 = vrot.slane %v2014_v28, 1  ;;  %v1955_v43 = vrot.slane %v1954_v44, 4  ;;  %v2135_v7 = vunpack.c.l.b16 %v2080_v50  ;;  %v1924_v1 = vadd.f32 %v3171_v41, %v4235_v62 }
 0x2b5   :  { %v2023_v56 = vmax.f32 %v2021_v30, %v2022_v52  ;;  %v1963_v55 = vmax.f32 %v1961_v54, %v1962_v53  ;;  %v2134_v45 = vunpack.c.l.b16 %v2079_v57  ;;  %v3175_v6 = vadd.f32 %v4253_v22, %v3069_v34 }
 0x2b6   :  { %v2016_v16 = vmax.f32 %v2014_v28, %v2015_v47  ;;  %v1956_v59 = vmax.f32 %v1954_v44, %v1955_v43  ;;  %v1922_v58 = vadd.f32 %v3173_v37, %v4235_v62  ;;  %v3177_v35 = vadd.f32 %v4255_v25, %v1848_v26 }
 0x2b7   :  { %v2058_v38 = vadd.f32 %v4279_v14, %v2023_v56  ;;  %v1964_v17 = vrot.slane %v1963_v55, 2  ;;  %v2151_v9 = vrot.slane %v2134_v45, 6  ;;  %v1925_v33 = vadd.f32 %v3175_v6, %v4241_v63 }
 0x2b8   :  { %v2057_v18 = vadd.f32 %v4279_v14, %v2016_v16  ;;  %v1957_v46 = vrot.slane %v1956_v59, 2  ;;  %v2154_v12 = vrot.slane %v2135_v7, 5  ;;  %v1923_v0 = vadd.f32 %v3177_v35, %v4241_v63 }
 0x2b9   :  { %v2074_v11 = vmax.f32 %v2058_v38, 0.0  ;;  %v1965_v13 = vmax.f32 %v1963_v55, %v1964_v17  ;;  %v2153_v22 = vsel %vm2152_vm2, %v2151_v9, %v4311_v5  ;;  %v2031_v42 = vmax.f32 %v1924_v1, %v1925_v33 }
 0x2ba   :  { %v2073_v24 = vmax.f32 %v2057_v18, 0.0  ;;  %v1958_v51 = vmax.f32 %v1956_v59, %v1957_v46  ;;  %v2156_v25 = vsel %vm2155_vm3, %v2154_v12, %v2153_v22  ;;  %v2024_v40 = vmax.f32 %v1922_v58, %v1923_v0 }
 0x2bb   :  { %v2090_v62 = vpack.c.bf16 %v2074_v11, %v2074_v11  ;;  %v1966_v31 = vrot.slane %v1965_v13, 1  ;;  %v2032_v39 = vrot.slane %v2031_v42, 4  ;;  %v2067_v60 = vmax.f32 %v2051_v3, 0.0 }
 0x2bc   :  { %v2089_v8 = vpack.c.bf16 %v2073_v24, %v2073_v24  ;;  %v1959_v10 = vrot.slane %v1958_v51, 1  ;;  %v2025_v49 = vrot.slane %v2024_v40, 4  ;;  %v2068_v5 = vmax.f32 %v4319_v36, 0.0  ;;  %v3300_v24 = vld [vmem:[#allocation5] sm:$0xff]  }
 0x2bd   :  { %v2145_v21 = vunpack.c.l.b16 %v2090_v62  ;;  %v1967_v15 = vmax.f32 %v1965_v13, %v1966_v31  ;;  %v2033_v32 = vmax.f32 %v2031_v42, %v2032_v39  ;;  %v2083_v28 = vpack.c.bf16 %v2067_v60, %v2067_v60  ;;  %v3301_v42 = vld [vmem:[#allocation5 + $0x8] sm:$0xff]   ;;  %v3302_v62 = vld [vmem:[#allocation5 + $0x10] sm:$0xff]   ;;  %v3303_v31 = vld [vmem:[#allocation5 + $0x18] sm:$0xff]  }
 0x2be   :  { %v2144_v61 = vunpack.c.l.b16 %v2089_v8  ;;  %v1960_v63 = vmax.f32 %v1958_v51, %v1959_v10  ;;  %v2026_v27 = vmax.f32 %v2024_v40, %v2025_v49  ;;  %v2084_v50 = vpack.c.bf16 %v2068_v5, %v2068_v5  ;;  %v3305_v40 = vld [vmem:[#allocation5 + $0x28] sm:$0xff]   ;;  %v3306_v8 = vld [vmem:[#allocation5 + $0x30] sm:$0xff]   ;;  %v3307_v10 = vld [vmem:[#allocation5 + $0x38] sm:$0xff]  }
 0x2bf   :  { %v2050_v23 = vadd.f32 %v4279_v14, %v1967_v15  ;;  %v2034_v30 = vrot.slane %v2033_v32, 2  ;;  %v2177_v54 = vrot.slane %v2145_v21, 3  ;;  %v2138_v47 = vunpack.c.l.b16 %v2083_v28  ;;  %v2746_v39 = vld [vmem:[%s4393_s5] ss:$0 sm:$0xff]  ;;  %s3358_s5 = scalar_lea.vmem %s2397_s11, 256 }
 0x2c0   :  { %v2175_v4 = vrot.slane %v2144_v61, 4  ;;  %v2049_v19 = vadd.f32 %v4279_v14, %v1960_v63  ;;  %v2027_v48 = vrot.slane %v2026_v27, 2  ;;  %v2139_v56 = vunpack.c.l.b16 %v2084_v50  ;;  %p3359_p2 = scmp.ne.s32.totalorder %s2397_s11, %s3358_s5  ;;  %p3364_p4 = scmp.lt.s32.totalorder %s3358_s5, %s3358_s5 }
 0x2c1   :  { %v2066_v20 = vmax.f32 %v2050_v23, 0.0  ;;  %v2035_v34 = vmax.f32 %v2033_v32, %v2034_v30  ;;  %v2163_v59 = vrot.slane %v2138_v47, 2 }
 0x2c2   :  { %v2176_v44 = vsel %vm2158_vm4, %v2175_v4, %v4332_v29  ;;  %v2065_v41 = vmax.f32 %v2049_v19, 0.0  ;;  %v2028_v52 = vmax.f32 %v2026_v27, %v2027_v48  ;;  %v2166_v17 = vrot.slane %v2139_v56, 1  ;;  %p3365_p5 = por %p3364_p4, %p3363_p3 }
 0x2c3   :  { %v2082_v36 = vpack.c.bf16 %v2066_v20, %v2066_v20  ;;  %v2178_v53 = vsel %vm2161_vm5, %v2177_v54, %v2176_v44  ;;  %v2036_v26 = vrot.slane %v2035_v34, 1 }
 0x2c4   :  { %v2081_v37 = vpack.c.bf16 %v2065_v41, %v2065_v41  ;;  %v2029_v57 = vrot.slane %v2028_v52, 1  ;;  %p3366_p6 = pnand %p3365_p5, %p3359_p2 }
 0x2c5   :  { %v2137_v3 = vunpack.c.l.b16 %v2082_v36  ;;  %v2037_v7 = vmax.f32 %v2035_v34, %v2036_v26 }
 0x2c6   :  { %v2136_v43 = vunpack.c.l.b16 %v2081_v37  ;;  %v2030_v55 = vmax.f32 %v2028_v52, %v2029_v57 }
 0x2c7   :  { %v2060_v45 = vadd.f32 %v4279_v14, %v2037_v7  ;;  %v2160_v29 = vrot.slane %v2137_v3, 3 }
 0x2c8   :  { %v2157_v1 = vrot.slane %v2136_v43, 4  ;;  %v2059_v16 = vadd.f32 %v4279_v14, %v2030_v55 }
 0x2c9   :  { %v2076_v38 = vmax.f32 %v2060_v45, 0.0 }
 0x2ca   :  { %v2159_v6 = vsel %vm2158_vm4, %v2157_v1, %v2156_v25  ;;  %v2075_v58 = vmax.f32 %v2059_v16, 0.0  ;;  %v3304_v25 = vld [vmem:[#allocation5 + $0x20] sm:$0xff]  }
 0x2cb   :  { %v2162_v35 = vsel %vm2161_vm5, %v2160_v29, %v2159_v6  ;;  %v2092_v9 = vpack.c.bf16 %v2076_v38, %v2076_v38 }
 0x2cc   :  { %v2165_v18 = vsel %vm2164_vm6, %v2163_v59, %v2162_v35  ;;  %v2091_v46 = vpack.c.bf16 %v2075_v58, %v2075_v58 }
 0x2cd   :  { %v2168_v33 = vsel %vm2167_vm7, %v2166_v17, %v2165_v18  ;;  %v2147_v12 = vunpack.c.l.b16 %v2092_v9 }
 0x2ce   :  { %v2146_v11 = vunpack.c.l.b16 %v2091_v46 }
 0x2cf   :  { %v2181_v0 = vrot.slane %v2147_v12, 1 }
 0x2d0   :  { %v2179_v13 = vrot.slane %v2146_v11, 2 }
 0x2d2   :  { %v2180_v14 = vsel %vm2164_vm6, %v2179_v13, %v2178_v53 }
 0x2d3   :  { %v2182_v22 = vsel %vm2167_vm7, %v2181_v0, %v2180_v14 }
 0x2d4   :  { %v2183_v51 = vpack.c.b16 %v2182_v22, %v2168_v33 }
 0x2d6   :  { %3087 = vmatmul.mubr.bf16.vlgmr.msra.gmra.mrb[52].mxu1 %v2183_v51 }
 0x2d7   :  { %3091 = vmatpush3.bf16.msra.mxu1 %v3300_v24  ;;  %3106 = vmatprep.mubr.msk.bf16.mxu1 %vm3396_vm0, %v3395_v2 }
 0x2d8   :  { %3092 = vmatprep.subr.bf16.mxu1 %v3395_v2 }
 0x2db   :  { %3093 = vmatpush3.bf16.msra.mxu1 %v3301_v42 }
 0x2dc   :  { %3094 = vmatprep.subr.bf16.mxu1 %v3395_v2 }
 0x2df   :  { %3095 = vmatpush3.bf16.msra.mxu1 %v3302_v62 }
 0x2e0   :  { %3096 = vmatprep.subr.bf16.mxu1 %v3395_v2 }
 0x2e3   :  { %3097 = vmatpush3.bf16.msra.mxu1 %v3303_v31 }
 0x2e4   :  { %3098 = vmatprep.subr.bf16.mxu1 %v3395_v2 }
 0x2e7   :  { %3099 = vmatpush3.bf16.msra.mxu1 %v3304_v25 }
 0x2e8   :  { %3100 = vmatprep.subr.bf16.mxu1 %v3395_v2 }
 0x2eb   :  { %3101 = vmatpush3.bf16.msra.mxu1 %v3305_v40 }
 0x2ec   :  { %3102 = vmatprep.subr.bf16.mxu1 %v3395_v2 }
 0x2ef   :  { %3103 = vmatpush3.bf16.msra.mxu1 %v3306_v8 }
 0x2f0   :  { %3104 = vmatprep.subr.bf16.mxu1 %v3395_v2  ;;  %v2755_v2 = vld [vmem:[%s4395_s7] ss:$0 sm:$0xff] }
 0x2f3   :  { %3105 = vmatpush3.bf16.msra.mxu1 %v3307_v10 }
 0x3a9   :  { %v2267_v21 = vpop.f32.mrb[52].mxu1 }
 0x3aa   :  { %v2268_v15 = vadd.f32 %v2746_v39, %v2267_v21  ;;  %v3088_v49 = vpop.f32.mrb[53].mxu1 }
 0x3ab   :  { %v2270_v60 = vpop.f32.mrb[54].mxu1 }
 0x3ac   :  { %v2271_v61 = vadd.f32 %v2746_v39, %v2270_v60  ;;  %v3089_v63 = vpop.f32.mrb[55].mxu1  ;;  %v2274_v32 = vmax.f32 %v2268_v15, 0.0 }
 0x3ae   :  { %v2275_v5 = vmax.f32 %v2271_v61, 0.0 }
 0x3b0   :  { %v2276_v23 = vpack.c.bf16 %v2275_v5, %v2274_v32 }
 0x3b2   :  { %3107 = vmatmul.mubr.bf16.vlgmr.msra.gmra.mrb[56].mxu1 %v2276_v23 }
 0x485   :  { %v2382_v27 = vpop.f32.mrb[56].mxu1 }
 0x486   :  { %v2383_v4 = vadd.f32 %v2755_v2, %v2382_v27  ;;  %v3108_v19 = vpop.f32.mrb[57].mxu1 }
 0x487   :  { %v2385_v30 = vpop.f32.mrb[58].mxu1 }
 0x488   :  { %2389 = vst [vmem:[#allocation7] sm:$0xff] %v2383_v4  ;;  %v2386_v54 = vadd.f32 %v2755_v2, %v2385_v30  ;;  %v3109_v20 = vpop.f32.mrb[59].mxu1 }
 0x48a   :  { %2390 = vst [vmem:[#allocation7 + $0x8] sm:$0xff] %v2386_v54 }
 0x48b   :  { %3369 = shalt.err (!%p3366_p6)
}
 0x48c   :  { %s3370_s12 = scalar_lea.hbm %s4396_s8, 256 }
 0x48d   :  { %p3371_p7 = scmp.ne.s32.totalorder %s4396_s8, %s3370_s12  ;;  %p3374_p8 = scmp.lt.u32.totalorder %s3370_s12, %s4396_s8 }
 0x48f   :  { %p3376_p9 = pnand %p3374_p8, %p3371_p7 }
 0x491   :  { %3379 = shalt.err (!%p3376_p9)
}
 0x492   :  { %s3398_s16 = smov 128   ;;  %s3399_s17 = smov 8  }
 0x493   :  { %2402 = dma.vmem_to_hbm [thread:$0]  %s2397_s11, 256, %s4396_s8, [#allocation4], %s3398_s16, %s3398_s16, %s3399_s17  }
 0x494   :  { %3384 = dma.done.wait [#allocation4], 256  }
 0x495   :  { %3385 = vsyncadd [#allocation4], 4294967040 }
 0x496   :  { %2406 = vsyncpa [#allocation3], 1 }
 0x497   :  { %2407 = vsyncpa [#allocation6], 1 }
 0x498   :  { %2408 = vsyncpa [#allocation4], 1 }

</bundles_post_ra>
